<compile_context>
chip_gen: v6e
topology: v6e:2x2x1
jax: 0.10.0
libtpu: 0.0.40
codegen_flags: <defaults>
</compile_context>

<pallas_src>
import jax
import jax.numpy as jnp
from jax.experimental import pallas as pl
from jax.experimental.pallas import tpu as pltpu


# ----------------------------------------------------------------------------
# Kernel
# ----------------------------------------------------------------------------
def _lambda_silu_kernel(x_ref, o_ref):
    """Elementwise f(x) = x * sigmoid(x) on one VMEM block.

    sigmoid is written as 0.5*(tanh(x/2)+1): a single EUP transcendental per
    element (vs exp + reciprocal), keeping the kernel memory-bound on v7x.
    Compute stays in the input dtype; v5e upcasts to f32 internally (correct,
    just extra VALU cast work).
    """
    x = x_ref[...]
    sig = 0.5 * (jnp.tanh(0.5 * x) + 1.0)
    o_ref[...] = (x * sig).astype(o_ref.dtype)


# ----------------------------------------------------------------------------
# Wrapper
# ----------------------------------------------------------------------------
_TARGET_BLOCK_BYTES = 2 * 1024 * 1024      # ~2 MiB per block, any dtype
_SMALL_FALLBACK_BYTES = 256 * 1024         # below this, let XLA fuse it
# Prefer wide lane-dense slabs; 1024 first, then other multiples of 128.
_COL_CANDIDATES = (1024, 2048, 512, 256, 128)


def _round_up(v, m):
    return ((v + m - 1) // m) * m


def lambda_forward(x):
    """Apply Lambda(f) with f(x) = x * sigmoid(x) via a Pallas TPU kernel.

    x: any shape (e.g. NCHW [N, C, H, W]).  Returns same shape/dtype.
    """
    orig_shape = x.shape
    orig_dtype = x.dtype
    total = x.size
    itemsize = jnp.dtype(orig_dtype).itemsize

    # Tiny inputs: kernel-launch + reshape plumbing dominates; XLA fuses this
    # elementwise op just fine.
    if total == 0 or total * itemsize <= _SMALL_FALLBACK_BYTES:
        return (x * jax.nn.sigmoid(x)).astype(orig_dtype)

    packing = max(1, 4 // itemsize)   # 1 for f32, 2 for bf16, 4 for int8/fp8
    sub = 8 * packing                 # sublane multiple for this dtype

    # ---- choose a lane-dense 2-D view of the flat buffer -------------------
    # Prefer a `cols` that exactly divides the flat size (no pad copy at all);
    # only pad when the size is not a multiple of 128 (rare for activations),
    # and then only by < cols elements.
    cols = None
    for c in _COL_CANDIDATES:
        if total % c == 0:
            cols = c
            break
    if cols is not None:
        padded = total
    else:
        cols = 1024
        padded = _round_up(total, cols)
    rows = padded // cols

    # ---- block shape: ~2 MiB in bytes, and always >= 2 grid programs -------
    blk_rows_target = max(
        sub, (_TARGET_BLOCK_BYTES // (cols * itemsize)) // sub * sub)
    half_rows = _round_up((rows + 1) // 2, sub)    # split across 2 TCs minimum
    block_rows = max(sub, min(blk_rows_target, half_rows))
    grid_m = pl.cdiv(rows, block_rows)             # ragged last block is fine:
    #                                                OOB reads are padding,
    #                                                OOB writes are dropped.

    x_flat = jnp.reshape(x, (-1,))
    if padded != total:
        # Rare fallback: flat size not a multiple of 128.
        x_flat = jnp.pad(x_flat, (0, padded - total))
    x2d = jnp.reshape(x_flat, (rows, cols))        # free view when unpadded

    out2d = pl.pallas_call(
        _lambda_silu_kernel,
        out_shape=jax.ShapeDtypeStruct((rows, cols), orig_dtype),
        grid=(grid_m,),
        in_specs=[pl.BlockSpec((block_rows, cols), lambda i: (i, 0))],
        out_specs=pl.BlockSpec((block_rows, cols), lambda i: (i, 0)),
        compiler_params=pltpu.CompilerParams(
            dimension_semantics=("parallel",),
        ),
        cost_estimate=pl.CostEstimate(
            flops=4 * padded,
            transcendentals=padded,                 # one tanh per element
            bytes_accessed=2 * padded * itemsize,
        ),
    )(x2d)

    out_flat = jnp.reshape(out2d, (-1,))
    if padded != total:
        out_flat = out_flat[:total]
    return jnp.reshape(out_flat, orig_shape)


class Lambda:
    """JAX counterpart of vel's Lambda layer: forward(x) = f(x)."""
    # TODO(synk): an arbitrary user-supplied Python callable cannot be
    # compiled generically; this instance wires in the Pallas SiLU hot path.

    def __init__(self, f):
        self.f = f

    def __call__(self, x):
        return self.f(x)


def lambda_forward_ref(x):
    return (x * jax.nn.sigmoid(x)).astype(x.dtype)


if __name__ == "__main__":
    layer = Lambda(lambda_forward)

    key = jax.random.PRNGKey(0)
    cases = [
        ((2, 4, 16, 16), jnp.float32, 1e-5),     # tiny NCHW: fused-XLA fallback
        ((2, 64, 64, 64), jnp.float32, 1e-5),    # Pallas path, aligned, no pad
        ((2, 64, 64, 64), jnp.bfloat16, 5e-2),   # Pallas path, dtype-aware block
        ((3, 5, 117, 131), jnp.float32, 1e-5),   # Pallas path, ragged size (pad)
    ]
    for shape, dtype, tol in cases:
        key, sk = jax.random.split(key)
        x = jax.random.normal(sk, shape, dtype=dtype)
        y = layer(x)
        jax.block_until_ready(y)
        y_ref = lambda_forward_ref(x)
        assert y.shape == x.shape and y.dtype == x.dtype
        assert jnp.allclose(y.astype(jnp.float32), y_ref.astype(jnp.float32),
                            atol=tol, rtol=tol), f"mismatch for {shape} {dtype}"

    print("KERNEL_OK")
</pallas_src>

<mosaic_0001>
module attributes {stable_mosaic.version = 11 : i64} {
  func.func @_lambda_silu_kernel(%arg0: i32, %arg1: memref<256x1024xf32, #tpu.memory_space<vmem>>, %arg2: memref<256x1024xf32, #tpu.memory_space<vmem>>) attributes {dimension_semantics = [#tpu.dimension_semantics<parallel>], iteration_bounds = array<i64: 2>, scalar_prefetch = 0 : i64, scratch_operands = 0 : i64, tpu.core_type = #tpu.core_type<tc>, window_params = [{transform_indices = @transform_0, window_bounds = array<i64: 256, 1024>}, {transform_indices = @transform_1, window_bounds = array<i64: 256, 1024>}]} {
    %c0 = arith.constant 0 : index
    %c0_0 = arith.constant 0 : index
    %0 = vector.load %arg1[%c0, %c0_0] : memref<256x1024xf32, #tpu.memory_space<vmem>>, vector<256x1024xf32>
    %cst = arith.constant 5.000000e-01 : f32
    %1 = vector.broadcast %cst : f32 to vector<256x1024xf32>
    %2 = arith.mulf %1, %0 : vector<256x1024xf32>
    %3 = math.tanh %2 : vector<256x1024xf32>
    %cst_1 = arith.constant 1.000000e+00 : f32
    %4 = vector.broadcast %cst_1 : f32 to vector<256x1024xf32>
    %5 = arith.addf %3, %4 : vector<256x1024xf32>
    %cst_2 = arith.constant 5.000000e-01 : f32
    %6 = vector.broadcast %cst_2 : f32 to vector<256x1024xf32>
    %7 = arith.mulf %6, %5 : vector<256x1024xf32>
    %8 = arith.mulf %0, %7 : vector<256x1024xf32>
    %c0_3 = arith.constant 0 : index
    %c0_4 = arith.constant 0 : index
    %9 = vector.load %arg2[%c0_3, %c0_4] : memref<256x1024xf32, #tpu.memory_space<vmem>>, vector<256x1024xf32>
    tpu.vector_store %arg2[%c0_3, %c0_4], %8 {strides = array<i32>} : memref<256x1024xf32, #tpu.memory_space<vmem>>, vector<256x1024xf32>,
    return
  }
  func.func @transform_0(%arg0: i32) -> (i32, i32) {
    %c0_i32 = arith.constant 0 : i32
    %c0_i32_0 = arith.constant 0 : i32
    return %arg0, %c0_i32 : i32, i32
  }
  func.func @transform_1(%arg0: i32) -> (i32, i32) {
    %c0_i32 = arith.constant 0 : i32
    %c0_i32_0 = arith.constant 0 : i32
    return %arg0, %c0_i32 : i32, i32
  }
}

</mosaic_0001>

<bundles_post_ra>
// kernel: tpu_custom_call.1
= control target key start
LH: loop header
LB: loop body
LE: loop exit
PB: predicated region body
PF: predicated region fallthrough
CT: control target
= control target key end

     0   :  { %6 = vsyncpa [#allocation3], 0  ;;  %s4538_s0 = inlined_call_operand.hbm [shape: f32[512,1024], index: 0, kind: input, shape index: {}]   ;;  %s4539_s1 = inlined_call_operand.hbm [shape: f32[512,1024], index: 1, kind: output, shape index: {}]  }
   0x1   :  { %8 = vsyncpa [#allocation3 + $0x1], 0 }
   0x2   :  { %9 = vsyncpa [#allocation4], 0 }
   0x3   :  { %11 = vsyncpa [#allocation4 + $0x1], 0  ;;  %s2710_s6 = smov 0   ;;  %s2712_s7 = smov 0  }
   0x4   :  { %s2714_s8 = smov 0   ;;  %s2716_s9 = smov 0  }
   0x5 LB: > { %s2731_s10 = sadd.s32 4294967295, %s2692_s9   ;;  %s2018_s11 = sadd.s32 4294967294, %s2692_s9   ;;  %s2692_s9 = sphi %s2716_s9, %s4668_s9   ;;  %s2688_s8 = sphi %s2714_s8, %s4667_s8   ;;  %s2684_s7 = sphi %s2712_s7, %s4666_s7   ;;  %s2680_s6 = sphi %s2710_s6, %s4665_s6  }
   0x6   : > { %s2735_s12 = sadd.s32 1, %s2692_s9   ;;  %s24_s13 = sadd.s32 1, %s2688_s8 }
   0x7   : > { %s21_s14 = ssub.s32 %s2692_s9, %s2735_s12  ;;  %p31_p0 = scmp.ne.s32.totalorder %s2688_s8, %s2684_s7 }
   0x8   : > { %p22_p1 = scmp.eq.s32.totalorder %s21_s14, 0  ;;  %p32_p2 = scmp.eq.s32.totalorder %s2692_s9, 0 }
   0x9   : > { %p37_p3 = scmp.ne.s32.totalorder %s2684_s7, %s2680_s6  ;;  %p38_p4 = scmp.eq.s32.totalorder %s2731_s10, 0 }
   0xa   : > { %s2747_s15 = scalar_select %p22_p1, %s2688_s8, %s24_s13  }
   0xb   : > { %p2749_p5 = por %p32_p2, %p31_p0  ;;  %p2753_p6 = por %p38_p4, %p37_p3 }
   0xc   : > { %p61_p7 = scmp.eq.s32.totalorder %s2731_s10, 1  ;;  %p67_p8 = scmp.eq.s32.totalorder %s2018_s11, 1 }
   0xd   : > { %s4573_s17 = scalar_select %p2753_p6, 1, 0 }
   0xe   : > { %p2050_p10 = scmp.lt.s32.totalorder %s2692_s9, 2  ;;  %p2760_p11 = por %p61_p7, %p31_p0 }
   0xf   : > { %p2764_p12 = por %p67_p8, %p37_p3  ;;  %s87_s20 = sand.u32 1, %s2688_s8  }
  0x10   : > { %s4574_s18 = scalar_select %p2760_p11, 1, 0 }
  0x11   : > { %s4575_s19 = scalar_select %p2764_p12, 1, 0 }
  0x12   : > { %s2035_s21 = sshll.u32 %s2692_s9, 15  ;;  %s2021_s22 = sshll.u32 %s87_s20, 11 }
  0x13   : > { %s2773_s25 = scalar_lea.hbm %s4538_s0, %s2035_s21  ;;  %s91_s26 = scalar_lea.vmem [#allocation2], %s2021_s22 }
  0x14   : > { %s99_s27 = sshll.u32 %s91_s26, 4  ;;  %p2777_p13 = pnand %p2050_p10, %p2749_p5  ;;  %s2781_s27 = int_to_ptr.vmem [resolvable:$true] %s99_s27 }
  0x15   : > { %s2783_s29 = scalar_lea.sflag [#allocation3], %s87_s20  ;;  %s2600_s30 = scalar_lea.hbm %s2773_s25, 32768 }
  0x16   : > { %p2601_p0 = scmp.ne.s32.totalorder %s2773_s25, %s2600_s30  ;;  %p2602_p1 = pneg %p2777_p13 }
  0x17   : > { %s2605_s4 = scalar_lea.hbm %s4538_s0, 65536  ;;  %p2606_p4 = scmp.lt.s32.totalorder %s2773_s25, %s4538_s0 }
  0x18   : > { %p2603_p2 = pnand %p2602_p1, %p2601_p0  ;;  %p2607_p5 = scmp.lt.s32.totalorder %s2605_s4, %s2600_s30 }
  0x1a   : > { %p2604_p3 = pneg %p2603_p2  ;;  %p2608_p7 = por %p2607_p5, %p2606_p4 }
  0x1c   : > { %p2609_p8 = pnand %p2608_p7, %p2604_p3 }
  0x1e   : > { %2612 = shalt.err (!%p2609_p8)
}
  0x1f   : > { %s2613_s13 = scalar_lea.vmem %s2781_s27, 32768  ;;  %s2694_s14 = smov [#allocation2]  }
  0x20   : > { %p2614_p10 = scmp.ne.s32.totalorder %s2781_s27, %s2613_s13  ;;  %s2618_s16 = sshll.u32 %s2694_s14, 4  ;;  %s2619_s16 = int_to_ptr.vmem [resolvable:$false] %s2618_s16 }
  0x21   : > { %s2620_s20 = scalar_lea.vmem %s2619_s16, 65536  ;;  %p2621_p2 = scmp.lt.s32.totalorder %s2781_s27, %s2619_s16 }
  0x22   : > { %p2616_p9 = pnand %p2614_p10, %p2602_p1  ;;  %p2622_p12 = scmp.lt.s32.totalorder %s2620_s20, %s2613_s13 }
  0x24   : > { %p2617_p0 = pneg %p2616_p9  ;;  %p2623_p11 = por %p2622_p12, %p2621_p2 }
  0x26   : > { %p2624_p6 = pnand %p2623_p11, %p2617_p0 }
  0x28   : > { %2627 = shalt.err (!%p2624_p6)
}
  0x29   : > { %s2695_s21 = smov 1024   ;;  %s2696_s22 = smov 64  }
  0x2a   : > { %2045 = dma.hbm_to_vmem [thread:$0]  (!%p2777_p13), %s2773_s25, 32768, %s2781_s27, %s2783_s29, %s2695_s21, %s2695_s21, %s2696_s22  }
  0x2b   : > { %p2025_p9 = scmp.ge.s32.totalorder %s2692_s9, 1  ;;  %p107_p1 = scmp.lt.s32.totalorder %s2692_s9, 3 }
  0x2d   : > { %p108_p3 = pnand %p2025_p9, %p107_p1 }
  0x2f   : > { %111 = sbr.rel (%p108_p3) target bundleno = 411 (0x19b), region = 24 }
  0x34   : > { %s2807_s23 = sand.u32 1, %s2684_s7   ;;  %p4577_p6 = scmp.ne.s32.totalorder %s4573_s17, 0 }
  0x35   : > { %s2026_s24 = sshll.u32 %s2807_s23, 11  ;;  %s114_s26 = scalar_lea.sflag [#allocation3], %s2807_s23 }
  0x36   : > { %s2813_s30 = scalar_lea.vmem [#allocation2], %s2026_s24 }
  0x37   : > { %2671 = dma.done.wait (%p4577_p6), %s114_s26, 32768  }
  0x38   : > { %2673 = vsyncadd (%p4577_p6), %s114_s26, 4294934528  ;;  %v2820_v0 = vld [vmem:[%s2813_s30] sm:$0xff]  ;;  %v2823_v1 = vld [vmem:[%s2813_s30 + $0x8] sm:$0xff]  ;;  %s3134_s17 = scalar_lea.vmem [#allocation5], %s2026_s24  ;;  %s2037_s25 = sshll.u32 %s2731_s10, 15 }
  0x39   : > { %v2826_v2 = vld [vmem:[%s2813_s30 + $0x10] sm:$0xff]  ;;  %v394_v3 = vmul.f32 0.5, %v2820_v0  ;;  %v395_v4 = vmul.f32 0.5, %v2823_v1  ;;  %v2832_v6 = vld [vmem:[%s2813_s30 + $0x18] sm:$0xff]  ;;  %v2835_v7 = vld [vmem:[%s2813_s30 + $0x20] sm:$0xff]  ;;  %s1945_s27 = sshll.u32 %s3134_s17, 4  ;;  %s4489_s2 = scalar_lea.hbm %s4539_s1, %s2037_s25  ;;  %s4491_s27 = int_to_ptr.vmem [resolvable:$true] %s1945_s27 }
  0x3a   : > { %v396_v5 = vmul.f32 0.5, %v2826_v2  ;;  %v2838_v8 = vld [vmem:[%s2813_s30 + $0x28] sm:$0xff]  ;;  %v397_v9 = vmul.f32 0.5, %v2832_v6  ;;  %v398_v10 = vmul.f32 0.5, %v2835_v7  ;;  %v2844_v12 = vld [vmem:[%s2813_s30 + $0x30] sm:$0xff]  ;;  %v2847_v13 = vld [vmem:[%s2813_s30 + $0x38] sm:$0xff] }
  0x3b   : > { %v399_v11 = vmul.f32 0.5, %v2838_v8  ;;  %v2850_v14 = vld [vmem:[%s2813_s30 + $0x40] sm:$0xff]  ;;  %2088 = vtanh.f32 %v394_v3  ;;  %v400_v15 = vmul.f32 0.5, %v2844_v12  ;;  %v401_v16 = vmul.f32 0.5, %v2847_v13  ;;  %v2856_v18 = vld [vmem:[%s2813_s30 + $0x48] sm:$0xff]  ;;  %v2859_v19 = vld [vmem:[%s2813_s30 + $0x50] sm:$0xff] }
  0x3c   : > { %v402_v17 = vmul.f32 0.5, %v2850_v14  ;;  %v2862_v20 = vld [vmem:[%s2813_s30 + $0x58] sm:$0xff]  ;;  %2090 = vtanh.f32 %v395_v4  ;;  %v403_v21 = vmul.f32 0.5, %v2856_v18  ;;  %v404_v22 = vmul.f32 0.5, %v2859_v19  ;;  %v2870_v24 = vld [vmem:[%s2813_s30 + $0x60] sm:$0xff]  ;;  %v2873_v25 = vld [vmem:[%s2813_s30 + $0x68] sm:$0xff] }
  0x3d   : > { %v2867_v23 = vmul.f32 0.5, %v2862_v20  ;;  %v2876_v26 = vld [vmem:[%s2813_s30 + $0x70] sm:$0xff]  ;;  %2092 = vtanh.f32 %v396_v5  ;;  %v2879_v27 = vmul.f32 0.5, %v2870_v24  ;;  %v2882_v28 = vmul.f32 0.5, %v2873_v25  ;;  %v2888_v30 = vld [vmem:[%s2813_s30 + $0x78] sm:$0xff]  ;;  %v2891_v31 = vld [vmem:[%s2813_s30 + $0x80] sm:$0xff] }
  0x3e   : > { %v2885_v29 = vmul.f32 0.5, %v2876_v26  ;;  %v2894_v32 = vld [vmem:[%s2813_s30 + $0x88] sm:$0xff]  ;;  %2094 = vtanh.f32 %v397_v9  ;;  %v2897_v33 = vmul.f32 0.5, %v2888_v30  ;;  %v2900_v34 = vmul.f32 0.5, %v2891_v31  ;;  %v2906_v36 = vld [vmem:[%s2813_s30 + $0x90] sm:$0xff]  ;;  %v2909_v37 = vld [vmem:[%s2813_s30 + $0x98] sm:$0xff] }
  0x3f   : > { %v2903_v35 = vmul.f32 0.5, %v2894_v32  ;;  %v2912_v38 = vld [vmem:[%s2813_s30 + $0xa0] sm:$0xff]  ;;  %2096 = vtanh.f32 %v398_v10  ;;  %v2915_v39 = vmul.f32 0.5, %v2906_v36  ;;  %v2918_v40 = vmul.f32 0.5, %v2909_v37  ;;  %v2924_v42 = vld [vmem:[%s2813_s30 + $0xa8] sm:$0xff]  ;;  %v2927_v43 = vld [vmem:[%s2813_s30 + $0xb0] sm:$0xff] }
  0x40   : > { %v2921_v41 = vmul.f32 0.5, %v2912_v38  ;;  %v2930_v44 = vld [vmem:[%s2813_s30 + $0xb8] sm:$0xff]  ;;  %2098 = vtanh.f32 %v399_v11  ;;  %v2933_v45 = vmul.f32 0.5, %v2924_v42  ;;  %v2936_v46 = vmul.f32 0.5, %v2927_v43  ;;  %v2942_v48 = vld [vmem:[%s2813_s30 + $0xc0] sm:$0xff]  ;;  %v2945_v49 = vld [vmem:[%s2813_s30 + $0xc8] sm:$0xff] }
  0x41   : > { %4578 = vst [vmem:[#allocation8_spill] sm:$0xff] %v2930_v44  ;;  %v2939_v47 = vmul.f32 0.5, %v2930_v44  ;;  %4579 = vst [vmem:[#allocation9_spill] sm:$0xff] %v2942_v48  ;;  %v2948_v50 = vld [vmem:[%s2813_s30 + $0xd0] sm:$0xff]  ;;  %2100 = vtanh.f32 %v400_v15  ;;  %v2951_v51 = vmul.f32 0.5, %v2942_v48  ;;  %v2954_v52 = vmul.f32 0.5, %v2945_v49 }
  0x42   : > { %4580 = vst [vmem:[#allocation10_spill] sm:$0xff] %v2945_v49  ;;  %4581 = vst [vmem:[#allocation11_spill] sm:$0xff] %v2948_v50  ;;  %v2957_v53 = vmul.f32 0.5, %v2948_v50  ;;  %v2960_v54 = vld [vmem:[%s2813_s30 + $0xd8] sm:$0xff]  ;;  %v2963_v55 = vld [vmem:[%s2813_s30 + $0xe0] sm:$0xff]  ;;  %2102 = vtanh.f32 %v401_v16  ;;  %s1931_s10 = scalar_lea.sflag [#allocation4], %s2807_s23 }
  0x43   : > { %4582 = vst [vmem:[#allocation12_spill] sm:$0xff] %v2960_v54  ;;  %4583 = vst [vmem:[#allocation13_spill] sm:$0xff] %v2963_v55  ;;  %v2966_v56 = vld [vmem:[%s2813_s30 + $0xe8] sm:$0xff]  ;;  %v2969_v57 = vmul.f32 0.5, %v2960_v54  ;;  %v2972_v58 = vmul.f32 0.5, %v2963_v55  ;;  %v2978_v60 = vld [vmem:[%s2813_s30 + $0xf0] sm:$0xff]  ;;  %2104 = vtanh.f32 %v402_v17 }
  0x44   : > { %4584 = vst [vmem:[#allocation14_spill] sm:$0xff] %v2966_v56  ;;  %v2975_v59 = vmul.f32 0.5, %v2966_v56  ;;  %4585 = vst [vmem:[#allocation15_spill] sm:$0xff] %v2978_v60  ;;  %v2981_v61 = vld [vmem:[%s2813_s30 + $0xf8] sm:$0xff]  ;;  %v2984_v62 = vld [vmem:[%s2813_s30 + $0x100] sm:$0xff]  ;;  %v2987_v63 = vmul.f32 0.5, %v2978_v60  ;;  %2106 = vtanh.f32 %v403_v21 }
  0x45   : > { %4586 = vst [vmem:[#allocation16_spill] sm:$0xff] %v2981_v61  ;;  %4587 = vst [vmem:[#allocation17_spill] sm:$0xff] %v2984_v62  ;;  %v2990_v3 = vmul.f32 0.5, %v2981_v61  ;;  %v2993_v4 = vmul.f32 0.5, %v2984_v62  ;;  %v2996_v5 = vld [vmem:[%s2813_s30 + $0x108] sm:$0xff]  ;;  %v2999_v9 = vld [vmem:[%s2813_s30 + $0x110] sm:$0xff]  ;;  %2108 = vtanh.f32 %v404_v22 }
  0x46   : > { %4588 = vst [vmem:[#allocation18_spill] sm:$0xff] %v2996_v5  ;;  %4589 = vst [vmem:[#allocation19_spill] sm:$0xff] %v2999_v9  ;;  %v3002_v10 = vld [vmem:[%s2813_s30 + $0x118] sm:$0xff]  ;;  %v3005_v11 = vmul.f32 0.5, %v2996_v5  ;;  %v3008_v15 = vmul.f32 0.5, %v2999_v9  ;;  %v3014_v17 = vld [vmem:[%s2813_s30 + $0x120] sm:$0xff]  ;;  %2110 = vtanh.f32 %v2867_v23 }
  0x47   : > { %4590 = vst [vmem:[#allocation20_spill] sm:$0xff] %v3002_v10  ;;  %v3011_v16 = vmul.f32 0.5, %v3002_v10  ;;  %4591 = vst [vmem:[#allocation21_spill] sm:$0xff] %v3014_v17  ;;  %v3017_v62 = vld [vmem:[%s2813_s30 + $0x128] sm:$0xff]  ;;  %v3020_v61 = vld [vmem:[%s2813_s30 + $0x130] sm:$0xff]  ;;  %v3023_v21 = vmul.f32 0.5, %v3014_v17  ;;  %2112 = vtanh.f32 %v2879_v27 }
  0x48   : > { %4592 = vst [vmem:[#allocation22_spill] sm:$0xff] %v3017_v62  ;;  %4593 = vst [vmem:[#allocation23_spill] sm:$0xff] %v3020_v61  ;;  %v3026_v5 = vmul.f32 0.5, %v3017_v62  ;;  %v3029_v9 = vmul.f32 0.5, %v3020_v61  ;;  %v3032_v10 = vld [vmem:[%s2813_s30 + $0x138] sm:$0xff]  ;;  %v3035_v60 = vld [vmem:[%s2813_s30 + $0x140] sm:$0xff]  ;;  %v2089_v48 = vpop.eup %2088  ;;  %2114 = vtanh.f32 %v2882_v28 }
  0x49   : > { %4594 = vst [vmem:[#allocation24_spill] sm:$0xff] %v3032_v10  ;;  %4595 = vst [vmem:[#allocation25_spill] sm:$0xff] %v3035_v60  ;;  %v3038_v56 = vld [vmem:[%s2813_s30 + $0x148] sm:$0xff]  ;;  %v3042_v22 = vmul.f32 0.5, %v3032_v10  ;;  %v3045_v62 = vmul.f32 0.5, %v3035_v60  ;;  %v3051_v61 = vld [vmem:[%s2813_s30 + $0x150] sm:$0xff]  ;;  %2116 = vtanh.f32 %v2885_v29 }
  0x4a   : > { %4596 = vst [vmem:[#allocation26_spill] sm:$0xff] %v3038_v56  ;;  %v3048_v17 = vmul.f32 0.5, %v3038_v56  ;;  %4599 = vst [vmem:[#allocation29_spill] sm:$0xff] %v3051_v61  ;;  %v3054_v55 = vld [vmem:[%s2813_s30 + $0x158] sm:$0xff]  ;;  %v3057_v54 = vld [vmem:[%s2813_s30 + $0x160] sm:$0xff]  ;;  %v3061_v23 = vmul.f32 0.5, %v3051_v61  ;;  %2118 = vtanh.f32 %v2897_v33 }
  0x4b   : > { %4597 = vst [vmem:[#allocation27_spill] sm:$0xff] %v3045_v62  ;;  %4600 = vst [vmem:[#allocation30_spill] sm:$0xff] %v3054_v55  ;;  %v3064_v60 = vmul.f32 0.5, %v3054_v55  ;;  %v3067_v56 = vmul.f32 0.5, %v3057_v54  ;;  %v3070_v10 = vld [vmem:[%s2813_s30 + $0x168] sm:$0xff]  ;;  %v3073_v50 = vld [vmem:[%s2813_s30 + $0x170] sm:$0xff]  ;;  %2120 = vtanh.f32 %v2900_v34 }
  0x4c   : > { %4598 = vst [vmem:[#allocation28_spill] sm:$0xff] %v3048_v17  ;;  %4601 = vst [vmem:[#allocation31_spill] sm:$0xff] %v3057_v54  ;;  %v3076_v49 = vld [vmem:[%s2813_s30 + $0x178] sm:$0xff]  ;;  %v3080_v27 = vmul.f32 0.5, %v3070_v10  ;;  %v3083_v55 = vmul.f32 0.5, %v3073_v50  ;;  %v3089_v61 = vld [vmem:[%s2813_s30 + $0x180] sm:$0xff] }
  0x4d   : > { %4602 = vst [vmem:[#allocation32_spill] sm:$0xff] %v3061_v23  ;;  %4603 = vst [vmem:[#allocation33_spill] sm:$0xff] %v3064_v60  ;;  %v3086_v54 = vmul.f32 0.5, %v3076_v49  ;;  %v3095_v60 = vld [vmem:[%s2813_s30 + $0x190] sm:$0xff]  ;;  %v2091_v23 = vpop.eup %2090  ;;  %v906_v17 = vadd.f32 1.0, %v2089_v48  ;;  %v3099_v28 = vmul.f32 0.5, %v3089_v61  ;;  %2122 = vtanh.f32 %v2903_v35 }
  0x4e   : > { %4604 = vst [vmem:[#allocation34_spill] sm:$0xff] %v3067_v56  ;;  %4605 = vst [vmem:[#allocation35_spill] sm:$0xff] %v3070_v10  ;;  %v3092_v56 = vld [vmem:[%s2813_s30 + $0x188] sm:$0xff]  ;;  %v3115_v48 = vmul.f32 0.5, %v3095_v60  ;;  %s2628_s3 = scalar_lea.vmem %s4491_s27, 32768  ;;  %p4662_p12 = scmp.ne.s32.totalorder %s4574_s18, 0 }
  0x4f   : > { %4606 = vst [vmem:[#allocation36_spill] sm:$0xff] %v3073_v50  ;;  %4607 = vst [vmem:[#allocation37_spill] sm:$0xff] %v3076_v49  ;;  %v3102_v10 = vmul.f32 0.5, %v3092_v56  ;;  %v3105_v50 = vld [vmem:[%s2813_s30 + $0x198] sm:$0xff]  ;;  %v3108_v49 = vld [vmem:[%s2813_s30 + $0x1a0] sm:$0xff]  ;;  %p2629_p11 = scmp.ne.s32.totalorder %s4491_s27, %s2628_s3  ;;  %s2697_s4 = smov [#allocation5]  }
  0x50   : > { %4608 = vst [vmem:[#allocation38_spill] sm:$0xff] %v3080_v27  ;;  %4609 = vst [vmem:[#allocation39_spill] sm:$0xff] %v3083_v55  ;;  %v2093_v55 = vpop.eup %2092  ;;  %v907_v27 = vadd.f32 1.0, %v2091_v23  ;;  %v3118_v29 = vmul.f32 0.5, %v3105_v50  ;;  %2124 = vtanh.f32 %v2915_v39  ;;  %s2632_s5 = sshll.u32 %s2697_s4, 4  ;;  %s2633_s5 = int_to_ptr.vmem [resolvable:$false] %s2632_s5 }
  0x51   : > { %4610 = vst [vmem:[#allocation40_spill] sm:$0xff] %v3086_v54  ;;  %4611 = vst [vmem:[#allocation41_spill] sm:$0xff] %v3089_v61  ;;  %v3111_v54 = vld [vmem:[%s2813_s30 + $0x1a8] sm:$0xff]  ;;  %v2095_v61 = vpop.eup %2094  ;;  %2126 = vtanh.f32 %v2918_v40  ;;  %p2630_p13 = pnand %p2629_p11, %p4662_p12  ;;  %s2634_s11 = scalar_lea.vmem %s2633_s5, 65536 }
  0x52   : > { %4612 = vst [vmem:[#allocation42_spill] sm:$0xff] %v3092_v56  ;;  %4613 = vst [vmem:[#allocation43_spill] sm:$0xff] %v3095_v60  ;;  %v908_v56 = vadd.f32 1.0, %v2093_v55  ;;  %v2097_v44 = vpop.eup %2096  ;;  %v1163_v62 = vmul.f32 0.5, %v907_v27  ;;  %v909_v23 = vadd.f32 1.0, %v2095_v61  ;;  %v3126_v33 = vmul.f32 0.5, %v3111_v54  ;;  %p2635_p5 = scmp.lt.s32.totalorder %s4491_s27, %s2633_s5  ;;  %p2636_p7 = scmp.lt.s32.totalorder %s2634_s11, %s2628_s3 }
  0x53   : > { %4614 = vst [vmem:[#allocation44_spill] sm:$0xff] %v3099_v28  ;;  %4615 = vst [vmem:[#allocation45_spill] sm:$0xff] %v3102_v10  ;;  %v1162_v28 = vmul.f32 0.5, %v906_v17  ;;  %v3122_v10 = vmul.f32 0.5, %v3108_v49  ;;  %v2099_v60 = vpop.eup %2098  ;;  %v910_v17 = vadd.f32 1.0, %v2097_v44  ;;  %2128 = vtanh.f32 %v2921_v41  ;;  %p2631_p4 = pneg %p2630_p13 }
  0x54   : > { %4616 = vst [vmem:[#allocation46_spill] sm:$0xff] %v3105_v50  ;;  %4617 = vst [vmem:[#allocation47_spill] sm:$0xff] %v3108_v49  ;;  %v2101_v34 = vpop.eup %2100  ;;  %v1419_v55 = vmul.f32 %v1163_v62, %v2823_v1  ;;  %v1165_v49 = vmul.f32 0.5, %v909_v23  ;;  %2130 = vtanh.f32 %v2933_v45  ;;  %p2637_p8 = por %p2636_p7, %p2635_p5 }
  0x55   : > { %4618 = vst [vmem:[#allocation48_spill] sm:$0xff] %v3118_v29  ;;  %4619 = vst [vmem:[#allocation49_spill] sm:$0xff] %v3122_v10  ;;  %v1418_v50 = vmul.f32 %v1162_v28, %v2820_v0  ;;  %v1164_v29 = vmul.f32 0.5, %v908_v56  ;;  %v911_v10 = vadd.f32 1.0, %v2099_v60  ;;  %v2103_v61 = vpop.eup %2102  ;;  %v1166_v35 = vmul.f32 0.5, %v910_v17 }
  0x56   : > { %v912_v39 = vadd.f32 1.0, %v2101_v34  ;;  %v2105_v1 = vpop.eup %2104  ;;  %1675 = vst [vmem:[%s3134_s17 + $0x8] sm:$0xff] %v1419_v55  ;;  %v1421_v44 = vmul.f32 %v1165_v49, %v2832_v6  ;;  %v913_v56 = vadd.f32 1.0, %v2103_v61  ;;  %2132 = vtanh.f32 %v2936_v46  ;;  %p2638_p10 = pnand %p2637_p8, %p2631_p4 }
  0x57   : > { %1674 = vst [vmem:[%s3134_s17] sm:$0xff] %v1418_v50  ;;  %v1420_v0 = vmul.f32 %v1164_v29, %v2826_v2  ;;  %v1167_v40 = vmul.f32 0.5, %v911_v10  ;;  %v2107_v60 = vpop.eup %2106  ;;  %v1422_v50 = vmul.f32 %v1166_v35, %v2835_v7  ;;  %v914_v2 = vadd.f32 1.0, %v2105_v1 }
  0x58   : > { %v1168_v62 = vmul.f32 0.5, %v912_v39  ;;  %v2109_v27 = vpop.eup %2108  ;;  %1677 = vst [vmem:[%s3134_s17 + $0x18] sm:$0xff] %v1421_v44  ;;  %v1169_v28 = vmul.f32 0.5, %v913_v56  ;;  %v915_v6 = vadd.f32 1.0, %v2107_v60  ;;  %2134 = vtanh.f32 %v2939_v47 }
  0x59   : > { %1676 = vst [vmem:[%s3134_s17 + $0x10] sm:$0xff] %v1420_v0  ;;  %v1423_v41 = vmul.f32 %v1167_v40, %v2838_v8  ;;  %v2111_v49 = vpop.eup %2110  ;;  %1678 = vst [vmem:[%s3134_s17 + $0x20] sm:$0xff] %v1422_v50  ;;  %v1170_v10 = vmul.f32 0.5, %v914_v2  ;;  %v916_v7 = vadd.f32 1.0, %v2109_v27  ;;  %2136 = vtanh.f32 %v2951_v51 }
  0x5a   : > { %v1424_v45 = vmul.f32 %v1168_v62, %v2844_v12  ;;  %v2113_v29 = vpop.eup %2112  ;;  %v1425_v46 = vmul.f32 %v1169_v28, %v2847_v13  ;;  %v1171_v23 = vmul.f32 0.5, %v915_v6  ;;  %v917_v8 = vadd.f32 1.0, %v2111_v49 }
  0x5b   : > { %1679 = vst [vmem:[%s3134_s17 + $0x28] sm:$0xff] %v1423_v41  ;;  %2138 = vtanh.f32 %v2954_v52  ;;  %v2115_v17 = vpop.eup %2114  ;;  %v1426_v47 = vmul.f32 %v1170_v10, %v2850_v14  ;;  %v1172_v34 = vmul.f32 0.5, %v916_v7  ;;  %v918_v12 = vadd.f32 1.0, %v2113_v29 }
  0x5c   : > { %1680 = vst [vmem:[%s3134_s17 + $0x30] sm:$0xff] %v1424_v45  ;;  %2140 = vtanh.f32 %v2957_v53  ;;  %v2117_v55 = vpop.eup %2116  ;;  %1681 = vst [vmem:[%s3134_s17 + $0x38] sm:$0xff] %v1425_v46  ;;  %v1427_v51 = vmul.f32 %v1171_v23, %v2856_v18  ;;  %v1173_v61 = vmul.f32 0.5, %v917_v8  ;;  %v919_v13 = vadd.f32 1.0, %v2115_v17 }
  0x5d   : > { %2142 = vtanh.f32 %v2969_v57  ;;  %v2119_v0 = vpop.eup %2118  ;;  %1682 = vst [vmem:[%s3134_s17 + $0x40] sm:$0xff] %v1426_v47  ;;  %v1428_v52 = vmul.f32 %v1172_v34, %v2859_v19  ;;  %v1174_v35 = vmul.f32 0.5, %v918_v12  ;;  %v920_v14 = vadd.f32 1.0, %v2117_v55  ;;  %v4620_v12 = vld [vmem:[#allocation27_spill] sm:$0xff] }
  0x5e   : > { %2144 = vtanh.f32 %v2972_v58  ;;  %v2121_v39 = vpop.eup %2120  ;;  %1683 = vst [vmem:[%s3134_s17 + $0x48] sm:$0xff] %v1427_v51  ;;  %v1429_v53 = vmul.f32 %v1173_v61, %v2862_v20  ;;  %v1175_v1 = vmul.f32 0.5, %v919_v13  ;;  %v921_v18 = vadd.f32 1.0, %v2119_v0  ;;  %v4622_v13 = vld [vmem:[#allocation28_spill] sm:$0xff] }
  0x5f   : > { %2146 = vtanh.f32 %v2975_v59  ;;  %v2123_v44 = vpop.eup %2122  ;;  %1684 = vst [vmem:[%s3134_s17 + $0x50] sm:$0xff] %v1428_v52  ;;  %v1430_v57 = vmul.f32 %v1174_v35, %v2870_v24  ;;  %v1176_v40 = vmul.f32 0.5, %v920_v14  ;;  %v922_v19 = vadd.f32 1.0, %v2121_v39  ;;  %v4624_v14 = vld [vmem:[#allocation32_spill] sm:$0xff] }
  0x60   : > { %2148 = vtanh.f32 %v2987_v63  ;;  %v2125_v56 = vpop.eup %2124  ;;  %1685 = vst [vmem:[%s3134_s17 + $0x58] sm:$0xff] %v1429_v53  ;;  %v1431_v58 = vmul.f32 %v1175_v1, %v2873_v25  ;;  %v1177_v60 = vmul.f32 0.5, %v921_v18  ;;  %v923_v20 = vadd.f32 1.0, %v2123_v44  ;;  %v4625_v53 = vld [vmem:[#allocation10_spill] sm:$0xff] }
  0x61   : > { %2150 = vtanh.f32 %v2990_v3  ;;  %v2127_v50 = vpop.eup %2126  ;;  %1686 = vst [vmem:[%s3134_s17 + $0x60] sm:$0xff] %v1430_v57  ;;  %v1432_v59 = vmul.f32 %v1176_v40, %v2876_v26  ;;  %v1178_v62 = vmul.f32 0.5, %v922_v19  ;;  %v924_v24 = vadd.f32 1.0, %v2125_v56  ;;  %v4626_v57 = vld [vmem:[#allocation33_spill] sm:$0xff]  ;;  %v4627_v19 = vld [vmem:[#allocation11_spill] sm:$0xff] }
  0x62   : > { %2152 = vtanh.f32 %v2993_v4  ;;  %v2129_v2 = vpop.eup %2128  ;;  %1687 = vst [vmem:[%s3134_s17 + $0x68] sm:$0xff] %v1431_v58  ;;  %v1433_v63 = vmul.f32 %v1177_v60, %v2888_v30  ;;  %v1179_v27 = vmul.f32 0.5, %v923_v20  ;;  %v925_v25 = vadd.f32 1.0, %v2127_v50  ;;  %v4628_v20 = vld [vmem:[#allocation34_spill] sm:$0xff] }
  0x63   : > { %2154 = vtanh.f32 %v3005_v11  ;;  %v2131_v41 = vpop.eup %2130  ;;  %1688 = vst [vmem:[%s3134_s17 + $0x70] sm:$0xff] %v1432_v59  ;;  %v1434_v3 = vmul.f32 %v1178_v62, %v2891_v31  ;;  %v1180_v28 = vmul.f32 0.5, %v924_v24  ;;  %v926_v26 = vadd.f32 1.0, %v2129_v2  ;;  %v4629_v59 = vld [vmem:[#allocation12_spill] sm:$0xff] }
  0x64   : > { %2156 = vtanh.f32 %v3008_v15  ;;  %v2133_v6 = vpop.eup %2132  ;;  %1689 = vst [vmem:[%s3134_s17 + $0x78] sm:$0xff] %v1433_v63  ;;  %v1435_v4 = vmul.f32 %v1179_v27, %v2894_v32  ;;  %v1181_v49 = vmul.f32 0.5, %v925_v25  ;;  %v927_v30 = vadd.f32 1.0, %v2131_v41  ;;  %v4630_v63 = vld [vmem:[#allocation38_spill] sm:$0xff]  ;;  %v4631_v25 = vld [vmem:[#allocation13_spill] sm:$0xff] }
  0x65   : > { %2158 = vtanh.f32 %v3011_v16  ;;  %v2135_v45 = vpop.eup %2134  ;;  %1690 = vst [vmem:[%s3134_s17 + $0x80] sm:$0xff] %v1434_v3  ;;  %v1436_v11 = vmul.f32 %v1180_v28, %v2906_v36  ;;  %v1182_v10 = vmul.f32 0.5, %v926_v26  ;;  %v928_v31 = vadd.f32 1.0, %v2133_v6  ;;  %v4632_v26 = vld [vmem:[#allocation39_spill] sm:$0xff] }
  0x66   : > { %2160 = vtanh.f32 %v3023_v21  ;;  %v2137_v7 = vpop.eup %2136  ;;  %1691 = vst [vmem:[%s3134_s17 + $0x88] sm:$0xff] %v1435_v4  ;;  %v1437_v15 = vmul.f32 %v1181_v49, %v2909_v37  ;;  %v1183_v29 = vmul.f32 0.5, %v927_v30  ;;  %v929_v32 = vadd.f32 1.0, %v2135_v45  ;;  %v4633_v4 = vld [vmem:[#allocation14_spill] sm:$0xff] }
  0x67   : > { %2162 = vtanh.f32 %v3026_v5  ;;  %1692 = vst [vmem:[%s3134_s17 + $0x90] sm:$0xff] %v1436_v11  ;;  %v1438_v16 = vmul.f32 %v1182_v10, %v2912_v38  ;;  %v1184_v23 = vmul.f32 0.5, %v928_v31  ;;  %v930_v36 = vadd.f32 1.0, %v2137_v7  ;;  %v4634_v11 = vld [vmem:[#allocation40_spill] sm:$0xff]  ;;  %v4635_v31 = vld [vmem:[#allocation15_spill] sm:$0xff] }
  0x68   : > { %v2139_v46 = vpop.eup %2138  ;;  %2164 = vtanh.f32 %v3029_v9  ;;  %1693 = vst [vmem:[%s3134_s17 + $0x98] sm:$0xff] %v1437_v15  ;;  %v1439_v21 = vmul.f32 %v1183_v29, %v2924_v42  ;;  %v1185_v17 = vmul.f32 0.5, %v929_v32  ;;  %v4621_v9 = vld [vmem:[#allocation8_spill] sm:$0xff] }
  0x69   : > { %v2141_v8 = vpop.eup %2140  ;;  %v931_v37 = vadd.f32 1.0, %v2139_v46  ;;  %2166 = vtanh.f32 %v3042_v22  ;;  %1694 = vst [vmem:[%s3134_s17 + $0xa0] sm:$0xff] %v1438_v16  ;;  %v1440_v5 = vmul.f32 %v1184_v23, %v2927_v43  ;;  %v1186_v34 = vmul.f32 0.5, %v930_v36  ;;  %v4623_v22 = vld [vmem:[#allocation9_spill] sm:$0xff]  ;;  %v4636_v32 = vld [vmem:[#allocation44_spill] sm:$0xff] }
  0x6a   : > { %v2143_v47 = vpop.eup %2142  ;;  %v932_v38 = vadd.f32 1.0, %v2141_v8  ;;  %2168 = vtanh.f32 %v4620_v12  ;;  %1695 = vst [vmem:[%s3134_s17 + $0xa8] sm:$0xff] %v1439_v21  ;;  %v1441_v51 = vmul.f32 %v1185_v17, %v4621_v9  ;;  %v4637_v16 = vld [vmem:[#allocation16_spill] sm:$0xff]  ;;  %v4638_v21 = vld [vmem:[#allocation45_spill] sm:$0xff]  ;;  %v4640_v12 = vld [vmem:[#allocation18_spill] sm:$0xff] }
  0x6b   : > { %v2145_v55 = vpop.eup %2144  ;;  %v1187_v61 = vmul.f32 0.5, %v931_v37  ;;  %v933_v42 = vadd.f32 1.0, %v2143_v47  ;;  %2170 = vtanh.f32 %v4622_v13  ;;  %1696 = vst [vmem:[%s3134_s17 + $0xb0] sm:$0xff] %v1440_v5  ;;  %v1442_v52 = vmul.f32 %v1186_v34, %v4623_v22  ;;  %v4639_v37 = vld [vmem:[#allocation17_spill] sm:$0xff] }
  0x6c   : > { %v2147_v0 = vpop.eup %2146  ;;  %v1188_v35 = vmul.f32 0.5, %v932_v38  ;;  %v934_v43 = vadd.f32 1.0, %v2145_v55  ;;  %2172 = vtanh.f32 %v4624_v14  ;;  %1697 = vst [vmem:[%s3134_s17 + $0xb8] sm:$0xff] %v1441_v51 }
  0x6d   : > { %v2149_v39 = vpop.eup %2148  ;;  %v1443_v1 = vmul.f32 %v1187_v61, %v4625_v53  ;;  %v1189_v18 = vmul.f32 0.5, %v933_v42  ;;  %v935_v44 = vadd.f32 1.0, %v2147_v0  ;;  %2174 = vtanh.f32 %v4626_v57  ;;  %1698 = vst [vmem:[%s3134_s17 + $0xc0] sm:$0xff] %v1442_v52  ;;  %v4641_v61 = vld [vmem:[#allocation48_spill] sm:$0xff]  ;;  %v3233_v42 = vld [vmem:[%s2813_s30 + $0x1b0] sm:$0xff]  ;;  %v4642_v0 = vld [vmem:[#allocation19_spill] sm:$0xff] }
  0x6e   : > { %v2151_v40 = vpop.eup %2150  ;;  %v1444_v56 = vmul.f32 %v1188_v35, %v4627_v19  ;;  %v1190_v58 = vmul.f32 0.5, %v934_v43  ;;  %v936_v60 = vadd.f32 1.0, %v2149_v39  ;;  %2176 = vtanh.f32 %v4628_v20  ;;  %v4643_v43 = vld [vmem:[#allocation49_spill] sm:$0xff]  ;;  %v4644_v39 = vld [vmem:[#allocation20_spill] sm:$0xff]  ;;  %v4646_v20 = vld [vmem:[#allocation22_spill] sm:$0xff] }
  0x6f   : > { %v2153_v50 = vpop.eup %2152  ;;  %1699 = vst [vmem:[%s3134_s17 + $0xc8] sm:$0xff] %v1443_v1  ;;  %v1445_v62 = vmul.f32 %v1189_v18, %v4629_v59  ;;  %v1191_v24 = vmul.f32 0.5, %v935_v44  ;;  %v937_v2 = vadd.f32 1.0, %v2151_v40  ;;  %2178 = vtanh.f32 %v4630_v63  ;;  %v4645_v57 = vld [vmem:[#allocation21_spill] sm:$0xff]  ;;  %v4647_v63 = vld [vmem:[#allocation23_spill] sm:$0xff] }
  0x70   : > { %v2155_v27 = vpop.eup %2154  ;;  %1700 = vst [vmem:[%s3134_s17 + $0xd0] sm:$0xff] %v1444_v56  ;;  %v1446_v41 = vmul.f32 %v1190_v58, %v4631_v25  ;;  %v1192_v3 = vmul.f32 0.5, %v936_v60  ;;  %v938_v28 = vadd.f32 1.0, %v2153_v50  ;;  %2180 = vtanh.f32 %v4632_v26  ;;  %v4648_v26 = vld [vmem:[#allocation24_spill] sm:$0xff] }
  0x71   : > { %v2157_v6 = vpop.eup %2156  ;;  %1701 = vst [vmem:[%s3134_s17 + $0xd8] sm:$0xff] %v1445_v62  ;;  %v1447_v49 = vmul.f32 %v1191_v24, %v4633_v4  ;;  %v1193_v30 = vmul.f32 0.5, %v937_v2  ;;  %v939_v45 = vadd.f32 1.0, %v2155_v27  ;;  %2182 = vtanh.f32 %v4634_v11 }
  0x72   : > { %v2159_v10 = vpop.eup %2158  ;;  %1702 = vst [vmem:[%s3134_s17 + $0xe0] sm:$0xff] %v1446_v41  ;;  %v1448_v7 = vmul.f32 %v1192_v3, %v4635_v31  ;;  %v1194_v15 = vmul.f32 0.5, %v938_v28  ;;  %v940_v29 = vadd.f32 1.0, %v2157_v6  ;;  %2184 = vtanh.f32 %v4636_v32  ;;  %v3256_v3 = vld [vmem:[%s2813_s30 + $0x1c8] sm:$0xff] }
  0x73   : > { %v2161_v46 = vpop.eup %2160  ;;  %1703 = vst [vmem:[%s3134_s17 + $0xe8] sm:$0xff] %v1447_v49  ;;  %v1449_v23 = vmul.f32 %v1193_v30, %v4637_v16  ;;  %v1195_v36 = vmul.f32 0.5, %v939_v45  ;;  %v941_v8 = vadd.f32 1.0, %v2159_v10  ;;  %2186 = vtanh.f32 %v4638_v21  ;;  %v4649_v45 = vld [vmem:[#allocation25_spill] sm:$0xff] }
  0x74   : > { %v2163_v17 = vpop.eup %2162  ;;  %1704 = vst [vmem:[%s3134_s17 + $0xf0] sm:$0xff] %v1448_v7  ;;  %v1450_v47 = vmul.f32 %v1194_v15, %v4639_v37  ;;  %v1196_v5 = vmul.f32 0.5, %v940_v29  ;;  %v942_v34 = vadd.f32 1.0, %v2161_v46  ;;  %2188 = vtanh.f32 %v3115_v48  ;;  %v3239_v48 = vld [vmem:[%s2813_s30 + $0x1b8] sm:$0xff]  ;;  %v4650_v29 = vld [vmem:[#allocation26_spill] sm:$0xff]  ;;  %v4651_v21 = vld [vmem:[#allocation29_spill] sm:$0xff] }
  0x75   : > { %v2165_v38 = vpop.eup %2164  ;;  %1705 = vst [vmem:[%s3134_s17 + $0xf8] sm:$0xff] %v1449_v23  ;;  %v1451_v55 = vmul.f32 %v1195_v36, %v4640_v12  ;;  %v1197_v9 = vmul.f32 0.5, %v941_v8  ;;  %v943_v51 = vadd.f32 1.0, %v2163_v17  ;;  %2190 = vtanh.f32 %v4641_v61  ;;  %v3267_v36 = vld [vmem:[%s2813_s30 + $0x1d0] sm:$0xff]  ;;  %v4653_v61 = vld [vmem:[#allocation31_spill] sm:$0xff] }
  0x76   : > { %v2167_v13 = vpop.eup %2166  ;;  %1706 = vst [vmem:[%s3134_s17 + $0x100] sm:$0xff] %v1450_v47  ;;  %v1452_v22 = vmul.f32 %v1196_v5, %v4642_v0  ;;  %v1198_v52 = vmul.f32 0.5, %v942_v34  ;;  %v944_v35 = vadd.f32 1.0, %v2165_v38  ;;  %2192 = vtanh.f32 %v4643_v43  ;;  %v3272_v5 = vld [vmem:[%s2813_s30 + $0x1d8] sm:$0xff]  ;;  %v4652_v38 = vld [vmem:[#allocation30_spill] sm:$0xff] }
  0x77   : > { %v2169_v14 = vpop.eup %2168  ;;  %1707 = vst [vmem:[%s3134_s17 + $0x108] sm:$0xff] %v1451_v55  ;;  %v1453_v53 = vmul.f32 %v1197_v9, %v4644_v39  ;;  %v1199_v1 = vmul.f32 0.5, %v943_v51  ;;  %v945_v18 = vadd.f32 1.0, %v2167_v13  ;;  %2194 = vtanh.f32 %v3126_v33  ;;  %v3251_v33 = vld [vmem:[%s2813_s30 + $0x1c0] sm:$0xff]  ;;  %v4654_v43 = vld [vmem:[#allocation35_spill] sm:$0xff] }
  0x78   : > { %v2171_v44 = vpop.eup %2170  ;;  %1708 = vst [vmem:[%s3134_s17 + $0x110] sm:$0xff] %v1452_v22  ;;  %v1454_v40 = vmul.f32 %v1198_v52, %v4645_v57  ;;  %v1200_v19 = vmul.f32 0.5, %v944_v35  ;;  %v946_v56 = vadd.f32 1.0, %v2169_v14  ;;  %v448_v58 = vmul.f32 0.5, %v3233_v42  ;;  %v4655_v57 = vld [vmem:[#allocation36_spill] sm:$0xff] }
  0x79   : > { %v2173_v60 = vpop.eup %2172  ;;  %1709 = vst [vmem:[%s3134_s17 + $0x118] sm:$0xff] %v1453_v53  ;;  %v1455_v50 = vmul.f32 %v1199_v1, %v4646_v20  ;;  %v1201_v59 = vmul.f32 0.5, %v945_v18  ;;  %v947_v62 = vadd.f32 1.0, %v2171_v44  ;;  %v449_v24 = vmul.f32 0.5, %v3239_v48  ;;  %v3283_v18 = vld [vmem:[%s2813_s30 + $0x1e0] sm:$0xff]  ;;  %v4656_v20 = vld [vmem:[#allocation37_spill] sm:$0xff] }
  0x7a   : > { %v2175_v2 = vpop.eup %2174  ;;  %1710 = vst [vmem:[%s3134_s17 + $0x120] sm:$0xff] %v1454_v40  ;;  %v1456_v27 = vmul.f32 %v1200_v19, %v4647_v63  ;;  %v1202_v25 = vmul.f32 0.5, %v946_v56  ;;  %v948_v41 = vadd.f32 1.0, %v2173_v60  ;;  %2196 = vtanh.f32 %v448_v58  ;;  %v3288_v58 = vld [vmem:[%s2813_s30 + $0x1e8] sm:$0xff] }
  0x7b   : > { %v2177_v28 = vpop.eup %2176  ;;  %1711 = vst [vmem:[%s3134_s17 + $0x128] sm:$0xff] %v1455_v50  ;;  %v1457_v6 = vmul.f32 %v1201_v59, %v4648_v26  ;;  %v1203_v4 = vmul.f32 0.5, %v947_v62  ;;  %v949_v49 = vadd.f32 1.0, %v2175_v2  ;;  %2198 = vtanh.f32 %v449_v24  ;;  %v3293_v24 = vld [vmem:[%s2813_s30 + $0x1f0] sm:$0xff]  ;;  %v4657_v63 = vld [vmem:[#allocation41_spill] sm:$0xff]  ;;  %v3299_v26 = vld [vmem:[%s2813_s30 + $0x1f8] sm:$0xff] }
  0x7c   : > { %v2179_v30 = vpop.eup %2178  ;;  %1712 = vst [vmem:[%s3134_s17 + $0x130] sm:$0xff] %v1456_v27  ;;  %v1458_v11 = vmul.f32 %v1202_v25, %v4649_v45  ;;  %v1204_v10 = vmul.f32 0.5, %v948_v41  ;;  %v950_v31 = vadd.f32 1.0, %v2177_v28  ;;  %v450_v7 = vmul.f32 0.5, %v3251_v33 }
  0x7d   : > { %v2181_v15 = vpop.eup %2180  ;;  %1713 = vst [vmem:[%s3134_s17 + $0x138] sm:$0xff] %v1457_v6  ;;  %v1459_v32 = vmul.f32 %v1203_v4, %v4650_v29  ;;  %v1205_v46 = vmul.f32 0.5, %v949_v49  ;;  %v951_v16 = vadd.f32 1.0, %v2179_v30  ;;  %v451_v23 = vmul.f32 0.5, %v3256_v3  ;;  %v4658_v6 = vld [vmem:[#allocation42_spill] sm:$0xff]  ;;  %v3311_v29 = vld [vmem:[%s2813_s30 + $0x208] sm:$0xff] }
  0x7e   : > { %v2183_v8 = vpop.eup %2182  ;;  %1714 = vst [vmem:[%s3134_s17 + $0x140] sm:$0xff] %v1458_v11  ;;  %v1460_v17 = vmul.f32 %v1204_v10, %v4651_v21  ;;  %v1206_v37 = vmul.f32 0.5, %v950_v31  ;;  %v952_v47 = vadd.f32 1.0, %v2181_v15  ;;  %2200 = vtanh.f32 %v450_v7  ;;  %v3305_v11 = vld [vmem:[%s2813_s30 + $0x200] sm:$0xff]  ;;  %v4659_v10 = vld [vmem:[#allocation43_spill] sm:$0xff]  ;;  %v3317_v21 = vld [vmem:[%s2813_s30 + $0x210] sm:$0xff] }
  0x7f   : > { %v2185_v34 = vpop.eup %2184  ;;  %1715 = vst [vmem:[%s3134_s17 + $0x148] sm:$0xff] %v1459_v32  ;;  %v1461_v12 = vmul.f32 %v1205_v46, %v4652_v38  ;;  %v1207_v55 = vmul.f32 0.5, %v951_v16  ;;  %v953_v9 = vadd.f32 1.0, %v2183_v8  ;;  %2202 = vtanh.f32 %v451_v23  ;;  %v4660_v46 = vld [vmem:[#allocation46_spill] sm:$0xff] }
  0x80   : > { %v2187_v51 = vpop.eup %2186  ;;  %1716 = vst [vmem:[%s3134_s17 + $0x150] sm:$0xff] %v1460_v17  ;;  %v1462_v13 = vmul.f32 %v1206_v37, %v4653_v61  ;;  %v1208_v0 = vmul.f32 0.5, %v952_v47  ;;  %v954_v22 = vadd.f32 1.0, %v2185_v34  ;;  %v452_v52 = vmul.f32 0.5, %v3267_v36  ;;  %v3320_v17 = vld [vmem:[%s2813_s30 + $0x218] sm:$0xff] }
  0x81   : > { %v2189_v35 = vpop.eup %2188  ;;  %1717 = vst [vmem:[%s3134_s17 + $0x158] sm:$0xff] %v1461_v12  ;;  %v1463_v14 = vmul.f32 %v1207_v55, %v4654_v43  ;;  %v1209_v39 = vmul.f32 0.5, %v953_v9  ;;  %v955_v53 = vadd.f32 1.0, %v2187_v51  ;;  %v453_v1 = vmul.f32 0.5, %v3272_v5  ;;  %v4661_v47 = vld [vmem:[#allocation47_spill] sm:$0xff]  ;;  %v3326_v55 = vld [vmem:[%s2813_s30 + $0x220] sm:$0xff] }
  0x82   : > { %v2191_v44 = vpop.eup %2190  ;;  %1718 = vst [vmem:[%s3134_s17 + $0x160] sm:$0xff] %v1462_v13  ;;  %v1464_v40 = vmul.f32 %v1208_v0, %v4655_v57  ;;  %v1210_v19 = vmul.f32 0.5, %v954_v22  ;;  %v956_v56 = vadd.f32 1.0, %v2189_v35  ;;  %2204 = vtanh.f32 %v452_v52  ;;  %v3329_v9 = vld [vmem:[%s2813_s30 + $0x228] sm:$0xff]  ;;  %v3335_v0 = vld [vmem:[%s2813_s30 + $0x230] sm:$0xff]  ;;  %v3341_v43 = vld [vmem:[%s2813_s30 + $0x238] sm:$0xff] }
  0x83   : > { %v2193_v60 = vpop.eup %2192  ;;  %1719 = vst [vmem:[%s3134_s17 + $0x168] sm:$0xff] %v1463_v14  ;;  %v1465_v50 = vmul.f32 %v1209_v39, %v4656_v20  ;;  %v1211_v59 = vmul.f32 0.5, %v955_v53  ;;  %v957_v62 = vadd.f32 1.0, %v2191_v44  ;;  %2206 = vtanh.f32 %v453_v1  ;;  %v3347_v1 = vld [vmem:[%s2813_s30 + $0x240] sm:$0xff]  ;;  %v3350_v44 = vld [vmem:[%s2813_s30 + $0x248] sm:$0xff]  ;;  %v3358_v20 = vld [vmem:[%s2813_s30 + $0x258] sm:$0xff] }
  0x84   : > { %v2195_v2 = vpop.eup %2194  ;;  %1720 = vst [vmem:[%s3134_s17 + $0x170] sm:$0xff] %v1464_v40  ;;  %v1466_v27 = vmul.f32 %v1210_v19, %v4657_v63  ;;  %v1212_v25 = vmul.f32 0.5, %v956_v56  ;;  %v958_v41 = vadd.f32 1.0, %v2193_v60  ;;  %v454_v28 = vmul.f32 0.5, %v3283_v18  ;;  %v3355_v60 = vld [vmem:[%s2813_s30 + $0x250] sm:$0xff] }
  0x85   : > { %1721 = vst [vmem:[%s3134_s17 + $0x178] sm:$0xff] %v1465_v50  ;;  %v1467_v4 = vmul.f32 %v1211_v59, %v4658_v6  ;;  %v1213_v49 = vmul.f32 0.5, %v957_v62  ;;  %v959_v30 = vadd.f32 1.0, %v2195_v2  ;;  %v455_v45 = vmul.f32 0.5, %v3288_v58  ;;  %v3363_v2 = vld [vmem:[%s2813_s30 + $0x260] sm:$0xff] }
  0x86   : > { %1722 = vst [vmem:[%s3134_s17 + $0x180] sm:$0xff] %v1466_v27  ;;  %v1468_v31 = vmul.f32 %v1212_v25, %v4659_v10  ;;  %v1214_v7 = vmul.f32 0.5, %v958_v41  ;;  %2208 = vtanh.f32 %v454_v28  ;;  %v456_v15 = vmul.f32 0.5, %v3293_v24  ;;  %v3369_v25 = vld [vmem:[%s2813_s30 + $0x268] sm:$0xff] }
  0x87   : > { %v2197_v32 = vpop.eup %2196  ;;  %1723 = vst [vmem:[%s3134_s17 + $0x188] sm:$0xff] %v1467_v4  ;;  %v1469_v16 = vmul.f32 %v1213_v49, %v4660_v46  ;;  %v1215_v23 = vmul.f32 0.5, %v959_v30  ;;  %2210 = vtanh.f32 %v455_v45  ;;  %v457_v8 = vmul.f32 0.5, %v3299_v26  ;;  %v3375_v4 = vld [vmem:[%s2813_s30 + $0x270] sm:$0xff]  ;;  %v3378_v49 = vld [vmem:[%s2813_s30 + $0x278] sm:$0xff] }
  0x88   : > { %v2199_v37 = vpop.eup %2198  ;;  %1724 = vst [vmem:[%s3134_s17 + $0x190] sm:$0xff] %v1468_v31  ;;  %v1470_v34 = vmul.f32 %v1214_v7, %v4661_v47  ;;  %v960_v38 = vadd.f32 1.0, %v2197_v32  ;;  %2212 = vtanh.f32 %v456_v15  ;;  %v458_v12 = vmul.f32 0.5, %v3305_v11  ;;  %v3383_v7 = vld [vmem:[%s2813_s30 + $0x280] sm:$0xff]  ;;  %v3386_v15 = vld [vmem:[%s2813_s30 + $0x288] sm:$0xff]  ;;  %v3397_v47 = vld [vmem:[%s2813_s30 + $0x298] sm:$0xff] }
  0x89   : > { %1725 = vst [vmem:[%s3134_s17 + $0x198] sm:$0xff] %v1469_v16  ;;  %v1471_v51 = vmul.f32 %v1215_v23, %v3111_v54  ;;  %v961_v61 = vadd.f32 1.0, %v2199_v37  ;;  %2214 = vtanh.f32 %v457_v8  ;;  %v459_v13 = vmul.f32 0.5, %v3311_v29  ;;  %v3391_v23 = vld [vmem:[%s2813_s30 + $0x290] sm:$0xff] }
  0x8a   : > { %1726 = vst [vmem:[%s3134_s17 + $0x1a0] sm:$0xff] %v1470_v34  ;;  %v1216_v22 = vmul.f32 0.5, %v960_v38  ;;  %2216 = vtanh.f32 %v458_v12  ;;  %v460_v52 = vmul.f32 0.5, %v3317_v21  ;;  %v461_v35 = vmul.f32 0.5, %v3320_v17 }
  0x8b   : > { %v2201_v54 = vpop.eup %2200  ;;  %1727 = vst [vmem:[%s3134_s17 + $0x1a8] sm:$0xff] %v1471_v51  ;;  %v1217_v14 = vmul.f32 0.5, %v961_v61  ;;  %2218 = vtanh.f32 %v459_v13  ;;  %v462_v39 = vmul.f32 0.5, %v3326_v55  ;;  %v463_v53 = vmul.f32 0.5, %v3329_v9  ;;  %v3403_v51 = vld [vmem:[%s2813_s30 + $0x2a0] sm:$0xff] }
  0x8c   : > { %v2203_v57 = vpop.eup %2202  ;;  %v1472_v40 = vmul.f32 %v1216_v22, %v3233_v42  ;;  %v962_v19 = vadd.f32 1.0, %v2201_v54  ;;  %2220 = vtanh.f32 %v460_v52  ;;  %v464_v56 = vmul.f32 0.5, %v3335_v0 }
  0x8d   : > { %v1473_v50 = vmul.f32 %v1217_v14, %v3239_v48  ;;  %v963_v59 = vadd.f32 1.0, %v2203_v57  ;;  %2222 = vtanh.f32 %v461_v35  ;;  %v465_v62 = vmul.f32 0.5, %v3341_v43  ;;  %v3408_v35 = vld [vmem:[%s2813_s30 + $0x2a8] sm:$0xff] }
  0x8e   : > { %1728 = vst [vmem:[%s3134_s17 + $0x1b0] sm:$0xff] %v1472_v40  ;;  %v1218_v42 = vmul.f32 0.5, %v962_v19  ;;  %2224 = vtanh.f32 %v462_v39  ;;  %v466_v63 = vmul.f32 0.5, %v3347_v1  ;;  %v467_v27 = vmul.f32 0.5, %v3350_v44 }
  0x8f   : > { %v2205_v48 = vpop.eup %2204  ;;  %1729 = vst [vmem:[%s3134_s17 + $0x1b8] sm:$0xff] %v1473_v50  ;;  %v1219_v41 = vmul.f32 0.5, %v963_v59  ;;  %2226 = vtanh.f32 %v463_v53  ;;  %v468_v28 = vmul.f32 0.5, %v3355_v60  ;;  %v469_v6 = vmul.f32 0.5, %v3358_v20 }
  0x90   : > { %v2207_v30 = vpop.eup %2206  ;;  %v1474_v45 = vmul.f32 %v1218_v42, %v3251_v33  ;;  %v964_v10 = vadd.f32 1.0, %v2205_v48  ;;  %2228 = vtanh.f32 %v464_v56  ;;  %v470_v31 = vmul.f32 0.5, %v3363_v2 }
  0x91   : > { %v1475_v32 = vmul.f32 %v1219_v41, %v3256_v3  ;;  %v965_v46 = vadd.f32 1.0, %v2207_v30  ;;  %2230 = vtanh.f32 %v465_v62  ;;  %v471_v16 = vmul.f32 0.5, %v3369_v25 }
  0x92   : > { %1730 = vst [vmem:[%s3134_s17 + $0x1c0] sm:$0xff] %v1474_v45  ;;  %v1220_v33 = vmul.f32 0.5, %v964_v10  ;;  %2232 = vtanh.f32 %v466_v63  ;;  %v472_v8 = vmul.f32 0.5, %v3375_v4  ;;  %v473_v37 = vmul.f32 0.5, %v3378_v49 }
  0x93   : > { %v2209_v34 = vpop.eup %2208  ;;  %1731 = vst [vmem:[%s3134_s17 + $0x1c8] sm:$0xff] %v1475_v32  ;;  %v1221_v3 = vmul.f32 0.5, %v965_v46  ;;  %2234 = vtanh.f32 %v467_v27  ;;  %v474_v38 = vmul.f32 0.5, %v3383_v7  ;;  %v475_v12 = vmul.f32 0.5, %v3386_v15 }
  0x94   : > { %v2211_v61 = vpop.eup %2210  ;;  %v1476_v13 = vmul.f32 %v1220_v33, %v3267_v36  ;;  %v966_v22 = vadd.f32 1.0, %v2209_v34  ;;  %2236 = vtanh.f32 %v468_v28  ;;  %v476_v52 = vmul.f32 0.5, %v3391_v23 }
  0x95   : > { %v2213_v54 = vpop.eup %2212  ;;  %v1477_v14 = vmul.f32 %v1221_v3, %v3272_v5  ;;  %v967_v39 = vadd.f32 1.0, %v2211_v61  ;;  %2238 = vtanh.f32 %v469_v6  ;;  %v477_v53 = vmul.f32 0.5, %v3397_v47 }
  0x96   : > { %v2215_v57 = vpop.eup %2214  ;;  %1732 = vst [vmem:[%s3134_s17 + $0x1d0] sm:$0xff] %v1476_v13  ;;  %v1222_v40 = vmul.f32 0.5, %v966_v22  ;;  %v968_v19 = vadd.f32 1.0, %v2213_v54  ;;  %2240 = vtanh.f32 %v470_v31  ;;  %v478_v36 = vmul.f32 0.5, %v3403_v51  ;;  %v3432_v22 = vld [vmem:[%s2813_s30 + $0x2b8] sm:$0xff] }
  0x97   : > { %v2217_v56 = vpop.eup %2216  ;;  %1733 = vst [vmem:[%s3134_s17 + $0x1d8] sm:$0xff] %v1477_v14  ;;  %v1223_v50 = vmul.f32 0.5, %v967_v39  ;;  %v969_v59 = vadd.f32 1.0, %v2215_v57  ;;  %2242 = vtanh.f32 %v471_v16  ;;  %v479_v62 = vmul.f32 0.5, %v3408_v35 }
  0x98   : > { %v2219_v5 = vpop.eup %2218  ;;  %v1478_v42 = vmul.f32 %v1222_v40, %v3283_v18  ;;  %v1224_v63 = vmul.f32 0.5, %v968_v19  ;;  %v970_v27 = vadd.f32 1.0, %v2217_v56  ;;  %2244 = vtanh.f32 %v472_v8 }
  0x99   : > { %v2221_v48 = vpop.eup %2220  ;;  %v1479_v41 = vmul.f32 %v1223_v50, %v3288_v58  ;;  %v1225_v28 = vmul.f32 0.5, %v969_v59  ;;  %v971_v6 = vadd.f32 1.0, %v2219_v5  ;;  %2246 = vtanh.f32 %v473_v37  ;;  %v3443_v59 = vld [vmem:[%s2813_s30 + $0x2c0] sm:$0xff] }
  0x9a   : > { %v2223_v30 = vpop.eup %2222  ;;  %1734 = vst [vmem:[%s3134_s17 + $0x1e0] sm:$0xff] %v1478_v42  ;;  %v1480_v45 = vmul.f32 %v1224_v63, %v3293_v24  ;;  %v1226_v10 = vmul.f32 0.5, %v970_v27  ;;  %v972_v31 = vadd.f32 1.0, %v2221_v48  ;;  %2248 = vtanh.f32 %v474_v38  ;;  %v3427_v38 = vld [vmem:[%s2813_s30 + $0x2b0] sm:$0xff]  ;;  %v3448_v63 = vld [vmem:[%s2813_s30 + $0x2c8] sm:$0xff] }
  0x9b   : > { %v2225_v18 = vpop.eup %2224  ;;  %1735 = vst [vmem:[%s3134_s17 + $0x1e8] sm:$0xff] %v1479_v41  ;;  %v1481_v32 = vmul.f32 %v1225_v28, %v3299_v26  ;;  %v1227_v46 = vmul.f32 0.5, %v971_v6  ;;  %v973_v16 = vadd.f32 1.0, %v2223_v30  ;;  %2250 = vtanh.f32 %v475_v12 }
  0x9c   : > { %v2227_v58 = vpop.eup %2226  ;;  %1736 = vst [vmem:[%s3134_s17 + $0x1f0] sm:$0xff] %v1480_v45  ;;  %v1482_v33 = vmul.f32 %v1226_v10, %v3305_v11  ;;  %v1228_v8 = vmul.f32 0.5, %v972_v31  ;;  %v974_v24 = vadd.f32 1.0, %v2225_v18  ;;  %2252 = vtanh.f32 %v476_v52 }
  0x9d   : > { %v2229_v37 = vpop.eup %2228  ;;  %1737 = vst [vmem:[%s3134_s17 + $0x1f8] sm:$0xff] %v1481_v32  ;;  %v1483_v34 = vmul.f32 %v1227_v46, %v3311_v29  ;;  %v1229_v3 = vmul.f32 0.5, %v973_v16  ;;  %v975_v26 = vadd.f32 1.0, %v2227_v58  ;;  %2254 = vtanh.f32 %v477_v53  ;;  %v3459_v46 = vld [vmem:[%s2813_s30 + $0x2d0] sm:$0xff] }
  0x9e   : > { %v2231_v12 = vpop.eup %2230  ;;  %1738 = vst [vmem:[%s3134_s17 + $0x200] sm:$0xff] %v1482_v33  ;;  %v1484_v61 = vmul.f32 %v1228_v8, %v3317_v21  ;;  %v1230_v11 = vmul.f32 0.5, %v974_v24  ;;  %v976_v13 = vadd.f32 1.0, %v2229_v37  ;;  %2256 = vtanh.f32 %v478_v36  ;;  %v3464_v8 = vld [vmem:[%s2813_s30 + $0x2d8] sm:$0xff] }
  0x9f   : > { %v2233_v52 = vpop.eup %2232  ;;  %1739 = vst [vmem:[%s3134_s17 + $0x208] sm:$0xff] %v1483_v34  ;;  %v1485_v29 = vmul.f32 %v1229_v3, %v3320_v17  ;;  %v1231_v54 = vmul.f32 0.5, %v975_v26  ;;  %v977_v14 = vadd.f32 1.0, %v2231_v12  ;;  %2258 = vtanh.f32 %v479_v62 }
  0xa0   : > { %v2235_v39 = vpop.eup %2234  ;;  %1740 = vst [vmem:[%s3134_s17 + $0x210] sm:$0xff] %v1484_v61  ;;  %v1486_v53 = vmul.f32 %v1230_v11, %v3326_v55  ;;  %v1232_v21 = vmul.f32 0.5, %v976_v13  ;;  %v978_v57 = vadd.f32 1.0, %v2233_v52  ;;  %v480_v40 = vmul.f32 0.5, %v3427_v38 }
  0xa1   : > { %v2237_v19 = vpop.eup %2236  ;;  %1741 = vst [vmem:[%s3134_s17 + $0x218] sm:$0xff] %v1485_v29  ;;  %v1487_v36 = vmul.f32 %v1231_v54, %v3329_v9  ;;  %v1233_v17 = vmul.f32 0.5, %v977_v14  ;;  %v979_v56 = vadd.f32 1.0, %v2235_v39  ;;  %v481_v50 = vmul.f32 0.5, %v3432_v22  ;;  %v3475_v54 = vld [vmem:[%s2813_s30 + $0x2e0] sm:$0xff] }
  0xa2   : > { %v2239_v62 = vpop.eup %2238  ;;  %1742 = vst [vmem:[%s3134_s17 + $0x220] sm:$0xff] %v1486_v53  ;;  %v1488_v55 = vmul.f32 %v1232_v21, %v3335_v0  ;;  %v1234_v5 = vmul.f32 0.5, %v978_v57  ;;  %v980_v42 = vadd.f32 1.0, %v2237_v19  ;;  %2260 = vtanh.f32 %v480_v40  ;;  %v3480_v21 = vld [vmem:[%s2813_s30 + $0x2e8] sm:$0xff] }
  0xa3   : > { %v2241_v27 = vpop.eup %2240  ;;  %1743 = vst [vmem:[%s3134_s17 + $0x228] sm:$0xff] %v1487_v36  ;;  %v1489_v9 = vmul.f32 %v1233_v17, %v3341_v43  ;;  %v1235_v48 = vmul.f32 0.5, %v979_v56  ;;  %v981_v41 = vadd.f32 1.0, %v2239_v62  ;;  %2262 = vtanh.f32 %v481_v50  ;;  %v3485_v36 = vld [vmem:[%s2813_s30 + $0x2f0] sm:$0xff] }
  0xa4   : > { %v2243_v28 = vpop.eup %2242  ;;  %1744 = vst [vmem:[%s3134_s17 + $0x230] sm:$0xff] %v1488_v55  ;;  %v1490_v6 = vmul.f32 %v1234_v5, %v3347_v1  ;;  %v1236_v0 = vmul.f32 0.5, %v980_v42  ;;  %v982_v30 = vadd.f32 1.0, %v2241_v27  ;;  %v482_v45 = vmul.f32 0.5, %v3443_v59  ;;  %v3491_v55 = vld [vmem:[%s2813_s30 + $0x2f8] sm:$0xff] }
  0xa5   : > { %v2245_v10 = vpop.eup %2244  ;;  %1745 = vst [vmem:[%s3134_s17 + $0x238] sm:$0xff] %v1489_v9  ;;  %v1491_v31 = vmul.f32 %v1235_v48, %v3350_v44  ;;  %v1237_v43 = vmul.f32 0.5, %v981_v41  ;;  %v983_v18 = vadd.f32 1.0, %v2243_v28  ;;  %v483_v32 = vmul.f32 0.5, %v3448_v63  ;;  %v3497_v9 = vld [vmem:[%s2813_s30 + $0x300] sm:$0xff]  ;;  %v3503_v28 = vld [vmem:[%s2813_s30 + $0x308] sm:$0xff] }
  0xa6   : > { %v2247_v16 = vpop.eup %2246  ;;  %1746 = vst [vmem:[%s3134_s17 + $0x240] sm:$0xff] %v1490_v6  ;;  %v1492_v1 = vmul.f32 %v1236_v0, %v3355_v60  ;;  %v1238_v58 = vmul.f32 0.5, %v982_v30  ;;  %v984_v33 = vadd.f32 1.0, %v2245_v10  ;;  %2264 = vtanh.f32 %v482_v45  ;;  %v3509_v45 = vld [vmem:[%s2813_s30 + $0x310] sm:$0xff] }
  0xa7   : > { %v2249_v24 = vpop.eup %2248  ;;  %1747 = vst [vmem:[%s3134_s17 + $0x248] sm:$0xff] %v1491_v31  ;;  %v1493_v44 = vmul.f32 %v1237_v43, %v3358_v20  ;;  %v1239_v37 = vmul.f32 0.5, %v983_v18  ;;  %v985_v34 = vadd.f32 1.0, %v2247_v16  ;;  %2266 = vtanh.f32 %v483_v32  ;;  %v3521_v32 = vld [vmem:[%s2813_s30 + $0x328] sm:$0xff] }
  0xa8   : > { %v2251_v3 = vpop.eup %2250  ;;  %1748 = vst [vmem:[%s3134_s17 + $0x250] sm:$0xff] %v1492_v1  ;;  %v1494_v26 = vmul.f32 %v1238_v58, %v3363_v2  ;;  %v1240_v60 = vmul.f32 0.5, %v984_v33  ;;  %v986_v12 = vadd.f32 1.0, %v2249_v24  ;;  %v484_v61 = vmul.f32 0.5, %v3459_v46 }
  0xa9   : > { %v2253_v11 = vpop.eup %2252  ;;  %1749 = vst [vmem:[%s3134_s17 + $0x258] sm:$0xff] %v1493_v44  ;;  %v1495_v13 = vmul.f32 %v1239_v37, %v3369_v25  ;;  %v1241_v20 = vmul.f32 0.5, %v985_v34  ;;  %v987_v52 = vadd.f32 1.0, %v2251_v3  ;;  %v485_v29 = vmul.f32 0.5, %v3464_v8  ;;  %v3533_v37 = vld [vmem:[%s2813_s30 + $0x338] sm:$0xff] }
  0xaa   : > { %v2255_v14 = vpop.eup %2254  ;;  %1750 = vst [vmem:[%s3134_s17 + $0x260] sm:$0xff] %v1494_v26  ;;  %v1496_v2 = vmul.f32 %v1240_v60, %v3375_v4  ;;  %v1242_v39 = vmul.f32 0.5, %v986_v12  ;;  %v988_v53 = vadd.f32 1.0, %v2253_v11  ;;  %2268 = vtanh.f32 %v484_v61  ;;  %v3539_v60 = vld [vmem:[%s2813_s30 + $0x340] sm:$0xff]  ;;  %v3542_v12 = vld [vmem:[%s2813_s30 + $0x348] sm:$0xff] }
  0xab   : > { %v2257_v25 = vpop.eup %2256  ;;  %1751 = vst [vmem:[%s3134_s17 + $0x268] sm:$0xff] %v1495_v13  ;;  %v1497_v57 = vmul.f32 %v1241_v20, %v3378_v49  ;;  %v1243_v40 = vmul.f32 0.5, %v987_v52  ;;  %v989_v19 = vadd.f32 1.0, %v2255_v14  ;;  %2270 = vtanh.f32 %v485_v29  ;;  %v3547_v52 = vld [vmem:[%s2813_s30 + $0x350] sm:$0xff]  ;;  %v3550_v29 = vld [vmem:[%s2813_s30 + $0x358] sm:$0xff] }
  0xac   : > { %v2259_v17 = vpop.eup %2258  ;;  %1752 = vst [vmem:[%s3134_s17 + $0x270] sm:$0xff] %v1496_v2  ;;  %v1498_v4 = vmul.f32 %v1242_v39, %v3383_v7  ;;  %v1244_v56 = vmul.f32 0.5, %v988_v53  ;;  %v990_v50 = vadd.f32 1.0, %v2257_v25  ;;  %v486_v62 = vmul.f32 0.5, %v3475_v54  ;;  %v3555_v53 = vld [vmem:[%s2813_s30 + $0x360] sm:$0xff] }
  0xad   : > { %1753 = vst [vmem:[%s3134_s17 + $0x278] sm:$0xff] %v1497_v57  ;;  %v1499_v49 = vmul.f32 %v1243_v40, %v3386_v15  ;;  %v1245_v5 = vmul.f32 0.5, %v989_v19  ;;  %v991_v42 = vadd.f32 1.0, %v2259_v17  ;;  %v487_v27 = vmul.f32 0.5, %v3480_v21  ;;  %v3561_v40 = vld [vmem:[%s2813_s30 + $0x368] sm:$0xff] }
  0xae   : > { %1754 = vst [vmem:[%s3134_s17 + $0x280] sm:$0xff] %v1498_v4  ;;  %v1500_v7 = vmul.f32 %v1244_v56, %v3391_v23  ;;  %v1246_v48 = vmul.f32 0.5, %v990_v50  ;;  %2272 = vtanh.f32 %v486_v62  ;;  %v488_v41 = vmul.f32 0.5, %v3485_v36  ;;  %v3512_v23 = vld [vmem:[%s2813_s30 + $0x318] sm:$0xff]  ;;  %v3567_v56 = vld [vmem:[%s2813_s30 + $0x370] sm:$0xff] }
  0xaf   : > { %v2261_v15 = vpop.eup %2260  ;;  %1755 = vst [vmem:[%s3134_s17 + $0x288] sm:$0xff] %v1499_v49  ;;  %v1501_v6 = vmul.f32 %v1245_v5, %v3397_v47  ;;  %v1247_v0 = vmul.f32 0.5, %v991_v42  ;;  %2274 = vtanh.f32 %v487_v27  ;;  %v489_v30 = vmul.f32 0.5, %v3491_v55  ;;  %v3518_v47 = vld [vmem:[%s2813_s30 + $0x320] sm:$0xff]  ;;  %v3570_v50 = vld [vmem:[%s2813_s30 + $0x378] sm:$0xff] }
  0xb0   : > { %v2263_v10 = vpop.eup %2262  ;;  %1756 = vst [vmem:[%s3134_s17 + $0x290] sm:$0xff] %v1500_v7  ;;  %v1502_v31 = vmul.f32 %v1246_v48, %v3403_v51  ;;  %v992_v43 = vadd.f32 1.0, %v2261_v15  ;;  %2276 = vtanh.f32 %v488_v41  ;;  %v490_v18 = vmul.f32 0.5, %v3497_v9  ;;  %v3527_v51 = vld [vmem:[%s2813_s30 + $0x330] sm:$0xff]  ;;  %v3575_v27 = vld [vmem:[%s2813_s30 + $0x380] sm:$0xff]  ;;  %v3578_v7 = vld [vmem:[%s2813_s30 + $0x388] sm:$0xff] }
  0xb1   : > { %1757 = vst [vmem:[%s3134_s17 + $0x298] sm:$0xff] %v1501_v6  ;;  %v1503_v16 = vmul.f32 %v1247_v0, %v3408_v35  ;;  %v993_v1 = vadd.f32 1.0, %v2263_v10  ;;  %2278 = vtanh.f32 %v489_v30  ;;  %v491_v58 = vmul.f32 0.5, %v3503_v28  ;;  %v3583_v6 = vld [vmem:[%s2813_s30 + $0x390] sm:$0xff]  ;;  %v3589_v10 = vld [vmem:[%s2813_s30 + $0x398] sm:$0xff] }
  0xb2   : > { %1758 = vst [vmem:[%s3134_s17 + $0x2a0] sm:$0xff] %v1502_v31  ;;  %v1248_v33 = vmul.f32 0.5, %v992_v43  ;;  %2280 = vtanh.f32 %v490_v18  ;;  %v492_v24 = vmul.f32 0.5, %v3509_v45  ;;  %v493_v44 = vmul.f32 0.5, %v3512_v23 }
  0xb3   : > { %v2265_v35 = vpop.eup %2264  ;;  %1759 = vst [vmem:[%s3134_s17 + $0x2a8] sm:$0xff] %v1503_v16  ;;  %v1249_v34 = vmul.f32 0.5, %v993_v1  ;;  %2282 = vtanh.f32 %v491_v58  ;;  %v494_v3 = vmul.f32 0.5, %v3518_v47  ;;  %v495_v26 = vmul.f32 0.5, %v3521_v32  ;;  %v3595_v16 = vld [vmem:[%s2813_s30 + $0x3a0] sm:$0xff] }
  0xb4   : > { %v2267_v61 = vpop.eup %2266  ;;  %v1504_v11 = vmul.f32 %v1248_v33, %v3427_v38  ;;  %v994_v13 = vadd.f32 1.0, %v2265_v35  ;;  %2284 = vtanh.f32 %v492_v24  ;;  %v496_v20 = vmul.f32 0.5, %v3527_v51 }
  0xb5   : > { %v1505_v14 = vmul.f32 %v1249_v34, %v3432_v22  ;;  %v995_v2 = vadd.f32 1.0, %v2267_v61  ;;  %2286 = vtanh.f32 %v493_v44  ;;  %v497_v39 = vmul.f32 0.5, %v3533_v37  ;;  %v3600_v44 = vld [vmem:[%s2813_s30 + $0x3a8] sm:$0xff] }
  0xb6   : > { %1760 = vst [vmem:[%s3134_s17 + $0x2b0] sm:$0xff] %v1504_v11  ;;  %v1250_v38 = vmul.f32 0.5, %v994_v13  ;;  %2288 = vtanh.f32 %v494_v3  ;;  %v498_v25 = vmul.f32 0.5, %v3539_v60  ;;  %v499_v57 = vmul.f32 0.5, %v3542_v12 }
  0xb7   : > { %v2269_v22 = vpop.eup %2268  ;;  %1761 = vst [vmem:[%s3134_s17 + $0x2b8] sm:$0xff] %v1505_v14  ;;  %v1251_v19 = vmul.f32 0.5, %v995_v2  ;;  %2290 = vtanh.f32 %v495_v26  ;;  %v500_v17 = vmul.f32 0.5, %v3547_v52  ;;  %v501_v4 = vmul.f32 0.5, %v3550_v29 }
  0xb8   : > { %v2271_v62 = vpop.eup %2270  ;;  %v1506_v49 = vmul.f32 %v1250_v38, %v3443_v59  ;;  %v996_v5 = vadd.f32 1.0, %v2269_v22  ;;  %2292 = vtanh.f32 %v496_v20  ;;  %v502_v42 = vmul.f32 0.5, %v3555_v53 }
  0xb9   : > { %v1507_v48 = vmul.f32 %v1251_v19, %v3448_v63  ;;  %v997_v41 = vadd.f32 1.0, %v2271_v62  ;;  %2294 = vtanh.f32 %v497_v39  ;;  %v503_v15 = vmul.f32 0.5, %v3561_v40 }
  0xba   : > { %1762 = vst [vmem:[%s3134_s17 + $0x2c0] sm:$0xff] %v1506_v49  ;;  %v1252_v59 = vmul.f32 0.5, %v996_v5  ;;  %2296 = vtanh.f32 %v498_v25  ;;  %v504_v0 = vmul.f32 0.5, %v3567_v56  ;;  %v505_v30 = vmul.f32 0.5, %v3570_v50 }
  0xbb   : > { %v2273_v31 = vpop.eup %2272  ;;  %1763 = vst [vmem:[%s3134_s17 + $0x2c8] sm:$0xff] %v1507_v48  ;;  %v1253_v63 = vmul.f32 0.5, %v997_v41  ;;  %2298 = vtanh.f32 %v499_v57  ;;  %v506_v43 = vmul.f32 0.5, %v3575_v27  ;;  %v507_v18 = vmul.f32 0.5, %v3578_v7 }
  0xbc   : > { %v2275_v1 = vpop.eup %2274  ;;  %v1508_v58 = vmul.f32 %v1252_v59, %v3459_v46  ;;  %v998_v33 = vadd.f32 1.0, %v2273_v31  ;;  %2300 = vtanh.f32 %v500_v17  ;;  %v508_v24 = vmul.f32 0.5, %v3583_v6 }
  0xbd   : > { %v2277_v35 = vpop.eup %2276  ;;  %v1509_v34 = vmul.f32 %v1253_v63, %v3464_v8  ;;  %v999_v3 = vadd.f32 1.0, %v2275_v1  ;;  %2302 = vtanh.f32 %v501_v4  ;;  %v509_v26 = vmul.f32 0.5, %v3589_v10 }
  0xbe   : > { %v2279_v61 = vpop.eup %2278  ;;  %1764 = vst [vmem:[%s3134_s17 + $0x2d0] sm:$0xff] %v1508_v58  ;;  %v1254_v11 = vmul.f32 0.5, %v998_v33  ;;  %v1000_v13 = vadd.f32 1.0, %v2277_v35  ;;  %2304 = vtanh.f32 %v502_v42  ;;  %v510_v46 = vmul.f32 0.5, %v3595_v16  ;;  %v3624_v33 = vld [vmem:[%s2813_s30 + $0x3b8] sm:$0xff] }
  0xbf   : > { %v2281_v20 = vpop.eup %2280  ;;  %1765 = vst [vmem:[%s3134_s17 + $0x2d8] sm:$0xff] %v1509_v34  ;;  %v1255_v14 = vmul.f32 0.5, %v999_v3  ;;  %v1001_v2 = vadd.f32 1.0, %v2279_v61  ;;  %2306 = vtanh.f32 %v503_v15  ;;  %v511_v39 = vmul.f32 0.5, %v3600_v44 }
  0xc0   : > { %v2283_v8 = vpop.eup %2282  ;;  %v1510_v38 = vmul.f32 %v1254_v11, %v3475_v54  ;;  %v1256_v25 = vmul.f32 0.5, %v1000_v13  ;;  %v1002_v57 = vadd.f32 1.0, %v2281_v20  ;;  %2308 = vtanh.f32 %v504_v0 }
  0xc1   : > { %v2285_v22 = vpop.eup %2284  ;;  %v1511_v19 = vmul.f32 %v1255_v14, %v3480_v21  ;;  %v1257_v17 = vmul.f32 0.5, %v1001_v2  ;;  %v1003_v4 = vadd.f32 1.0, %v2283_v8  ;;  %2310 = vtanh.f32 %v505_v30  ;;  %v3635_v2 = vld [vmem:[%s2813_s30 + $0x3c0] sm:$0xff] }
  0xc2   : > { %v2287_v62 = vpop.eup %2286  ;;  %1766 = vst [vmem:[%s3134_s17 + $0x2e0] sm:$0xff] %v1510_v38  ;;  %v1512_v49 = vmul.f32 %v1256_v25, %v3485_v36  ;;  %v1258_v5 = vmul.f32 0.5, %v1002_v57  ;;  %v1004_v42 = vadd.f32 1.0, %v2285_v22  ;;  %2312 = vtanh.f32 %v506_v43  ;;  %v3619_v43 = vld [vmem:[%s2813_s30 + $0x3b0] sm:$0xff]  ;;  %v3640_v25 = vld [vmem:[%s2813_s30 + $0x3c8] sm:$0xff] }
  0xc3   : > { %v2289_v54 = vpop.eup %2288  ;;  %1767 = vst [vmem:[%s3134_s17 + $0x2e8] sm:$0xff] %v1511_v19  ;;  %v1513_v48 = vmul.f32 %v1257_v17, %v3491_v55  ;;  %v1259_v41 = vmul.f32 0.5, %v1003_v4  ;;  %v1005_v15 = vadd.f32 1.0, %v2287_v62  ;;  %2314 = vtanh.f32 %v507_v18 }
  0xc4   : > { %v2291_v21 = vpop.eup %2290  ;;  %1768 = vst [vmem:[%s3134_s17 + $0x2f0] sm:$0xff] %v1512_v49  ;;  %v1514_v59 = vmul.f32 %v1258_v5, %v3497_v9  ;;  %v1260_v0 = vmul.f32 0.5, %v1004_v42  ;;  %v1006_v36 = vadd.f32 1.0, %v2289_v54  ;;  %2316 = vtanh.f32 %v508_v24 }
  0xc5   : > { %v2293_v30 = vpop.eup %2292  ;;  %1769 = vst [vmem:[%s3134_s17 + $0x2f8] sm:$0xff] %v1513_v48  ;;  %v1515_v31 = vmul.f32 %v1259_v41, %v3503_v28  ;;  %v1261_v63 = vmul.f32 0.5, %v1005_v15  ;;  %v1007_v55 = vadd.f32 1.0, %v2291_v21  ;;  %2318 = vtanh.f32 %v509_v26  ;;  %v3651_v41 = vld [vmem:[%s2813_s30 + $0x3d0] sm:$0xff] }
  0xc6   : > { %v2295_v18 = vpop.eup %2294  ;;  %1770 = vst [vmem:[%s3134_s17 + $0x300] sm:$0xff] %v1514_v59  ;;  %v1516_v1 = vmul.f32 %v1260_v0, %v3509_v45  ;;  %v1262_v9 = vmul.f32 0.5, %v1006_v36  ;;  %v1008_v58 = vadd.f32 1.0, %v2293_v30  ;;  %2320 = vtanh.f32 %v510_v46  ;;  %v3656_v0 = vld [vmem:[%s2813_s30 + $0x3d8] sm:$0xff] }
  0xc7   : > { %v2297_v24 = vpop.eup %2296  ;;  %1771 = vst [vmem:[%s3134_s17 + $0x308] sm:$0xff] %v1515_v31  ;;  %v1517_v28 = vmul.f32 %v1261_v63, %v3512_v23  ;;  %v1263_v35 = vmul.f32 0.5, %v1007_v55  ;;  %v1009_v34 = vadd.f32 1.0, %v2295_v18  ;;  %2322 = vtanh.f32 %v511_v39 }
  0xc8   : > { %v2299_v3 = vpop.eup %2298  ;;  %1772 = vst [vmem:[%s3134_s17 + $0x310] sm:$0xff] %v1516_v1  ;;  %v1518_v26 = vmul.f32 %v1262_v9, %v3518_v47  ;;  %v1264_v45 = vmul.f32 0.5, %v1008_v58  ;;  %v1010_v61 = vadd.f32 1.0, %v2297_v24  ;;  %v512_v11 = vmul.f32 0.5, %v3619_v43 }
  0xc9   : > { %v2301_v13 = vpop.eup %2300  ;;  %1773 = vst [vmem:[%s3134_s17 + $0x318] sm:$0xff] %v1517_v28  ;;  %v1519_v46 = vmul.f32 %v1263_v35, %v3521_v32  ;;  %v1265_v23 = vmul.f32 0.5, %v1009_v34  ;;  %v1011_v20 = vadd.f32 1.0, %v2299_v3  ;;  %v513_v14 = vmul.f32 0.5, %v3624_v33  ;;  %v3667_v35 = vld [vmem:[%s2813_s30 + $0x3e0] sm:$0xff] }
  0xca   : > { %v2303_v39 = vpop.eup %2302  ;;  %1774 = vst [vmem:[%s3134_s17 + $0x320] sm:$0xff] %v1518_v26  ;;  %v1520_v47 = vmul.f32 %v1264_v45, %v3527_v51  ;;  %v1266_v8 = vmul.f32 0.5, %v1010_v61  ;;  %v1012_v38 = vadd.f32 1.0, %v2301_v13  ;;  %2324 = vtanh.f32 %v512_v11  ;;  %v3672_v45 = vld [vmem:[%s2813_s30 + $0x3e8] sm:$0xff] }
  0xcb   : > { %v2305_v57 = vpop.eup %2304  ;;  %1775 = vst [vmem:[%s3134_s17 + $0x328] sm:$0xff] %v1519_v46  ;;  %v1521_v32 = vmul.f32 %v1265_v23, %v3533_v37  ;;  %v1267_v22 = vmul.f32 0.5, %v1011_v20  ;;  %v1013_v19 = vadd.f32 1.0, %v2303_v39  ;;  %2326 = vtanh.f32 %v513_v14  ;;  %v3677_v46 = vld [vmem:[%s2813_s30 + $0x3f0] sm:$0xff] }
  0xcc   : > { %v2307_v17 = vpop.eup %2306  ;;  %1776 = vst [vmem:[%s3134_s17 + $0x330] sm:$0xff] %v1520_v47  ;;  %v1522_v4 = vmul.f32 %v1266_v8, %v3539_v60  ;;  %v1268_v51 = vmul.f32 0.5, %v1012_v38  ;;  %v1014_v62 = vadd.f32 1.0, %v2305_v57  ;;  %v514_v49 = vmul.f32 0.5, %v3635_v2  ;;  %v3683_v47 = vld [vmem:[%s2813_s30 + $0x3f8] sm:$0xff] }
  0xcd   : > { %v2309_v5 = vpop.eup %2308  ;;  %1777 = vst [vmem:[%s3134_s17 + $0x338] sm:$0xff] %v1521_v32  ;;  %v1523_v42 = vmul.f32 %v1267_v22, %v3542_v12  ;;  %v1269_v37 = vmul.f32 0.5, %v1013_v19  ;;  %v1015_v54 = vadd.f32 1.0, %v2307_v17  ;;  %v515_v48 = vmul.f32 0.5, %v3640_v25  ;;  %v3689_v32 = vld [vmem:[%s2813_s30 + $0x400] sm:$0xff]  ;;  %v3695_v17 = vld [vmem:[%s2813_s30 + $0x408] sm:$0xff] }
  0xce   : > { %v2311_v15 = vpop.eup %2310  ;;  %1778 = vst [vmem:[%s3134_s17 + $0x340] sm:$0xff] %v1522_v4  ;;  %v1524_v60 = vmul.f32 %v1268_v51, %v3547_v52  ;;  %v1270_v21 = vmul.f32 0.5, %v1014_v62  ;;  %v1016_v59 = vadd.f32 1.0, %v2309_v5  ;;  %2328 = vtanh.f32 %v514_v49  ;;  %v3701_v49 = vld [vmem:[%s2813_s30 + $0x410] sm:$0xff] }
  0xcf   : > { %v2313_v36 = vpop.eup %2312  ;;  %1779 = vst [vmem:[%s3134_s17 + $0x348] sm:$0xff] %v1523_v42  ;;  %v1525_v12 = vmul.f32 %v1269_v37, %v3550_v29  ;;  %v1271_v30 = vmul.f32 0.5, %v1015_v54  ;;  %v1017_v31 = vadd.f32 1.0, %v2311_v15  ;;  %2330 = vtanh.f32 %v515_v48  ;;  %v3713_v48 = vld [vmem:[%s2813_s30 + $0x428] sm:$0xff] }
  0xd0   : > { %v2315_v63 = vpop.eup %2314  ;;  %1780 = vst [vmem:[%s3134_s17 + $0x350] sm:$0xff] %v1524_v60  ;;  %v1526_v55 = vmul.f32 %v1270_v21, %v3555_v53  ;;  %v1272_v52 = vmul.f32 0.5, %v1016_v59  ;;  %v1018_v18 = vadd.f32 1.0, %v2313_v36  ;;  %v516_v1 = vmul.f32 0.5, %v3651_v41 }
  0xd1   : > { %v2317_v9 = vpop.eup %2316  ;;  %1781 = vst [vmem:[%s3134_s17 + $0x358] sm:$0xff] %v1525_v12  ;;  %v1527_v58 = vmul.f32 %v1271_v30, %v3561_v40  ;;  %v1273_v29 = vmul.f32 0.5, %v1017_v31  ;;  %v1019_v24 = vadd.f32 1.0, %v2315_v63  ;;  %v517_v28 = vmul.f32 0.5, %v3656_v0  ;;  %v3725_v30 = vld [vmem:[%s2813_s30 + $0x438] sm:$0xff] }
  0xd2   : > { %v2319_v34 = vpop.eup %2318  ;;  %1782 = vst [vmem:[%s3134_s17 + $0x360] sm:$0xff] %v1526_v55  ;;  %v1528_v53 = vmul.f32 %v1272_v52, %v3567_v56  ;;  %v1274_v3 = vmul.f32 0.5, %v1018_v18  ;;  %v1020_v26 = vadd.f32 1.0, %v2317_v9  ;;  %2332 = vtanh.f32 %v516_v1  ;;  %v3731_v52 = vld [vmem:[%s2813_s30 + $0x440] sm:$0xff]  ;;  %v3734_v18 = vld [vmem:[%s2813_s30 + $0x448] sm:$0xff] }
  0xd3   : > { %v2321_v40 = vpop.eup %2320  ;;  %1783 = vst [vmem:[%s3134_s17 + $0x368] sm:$0xff] %v1527_v58  ;;  %v1529_v61 = vmul.f32 %v1273_v29, %v3570_v50  ;;  %v1275_v11 = vmul.f32 0.5, %v1019_v24  ;;  %v1021_v13 = vadd.f32 1.0, %v2319_v34  ;;  %2334 = vtanh.f32 %v517_v28  ;;  %v3739_v24 = vld [vmem:[%s2813_s30 + $0x450] sm:$0xff]  ;;  %v3742_v28 = vld [vmem:[%s2813_s30 + $0x458] sm:$0xff] }
  0xd4   : > { %v2323_v23 = vpop.eup %2322  ;;  %1784 = vst [vmem:[%s3134_s17 + $0x370] sm:$0xff] %v1528_v53  ;;  %v1530_v56 = vmul.f32 %v1274_v3, %v3575_v27  ;;  %v1276_v20 = vmul.f32 0.5, %v1020_v26  ;;  %v1022_v14 = vadd.f32 1.0, %v2321_v40  ;;  %v518_v39 = vmul.f32 0.5, %v3667_v35  ;;  %v3747_v26 = vld [vmem:[%s2813_s30 + $0x460] sm:$0xff] }
  0xd5   : > { %1785 = vst [vmem:[%s3134_s17 + $0x378] sm:$0xff] %v1529_v61  ;;  %v1531_v50 = vmul.f32 %v1275_v11, %v3578_v7  ;;  %v1277_v8 = vmul.f32 0.5, %v1021_v13  ;;  %v1023_v38 = vadd.f32 1.0, %v2323_v23  ;;  %v519_v57 = vmul.f32 0.5, %v3672_v45  ;;  %v3753_v11 = vld [vmem:[%s2813_s30 + $0x468] sm:$0xff] }
  0xd6   : > { %1786 = vst [vmem:[%s3134_s17 + $0x380] sm:$0xff] %v1530_v56  ;;  %v1532_v27 = vmul.f32 %v1276_v20, %v3583_v6  ;;  %v1278_v22 = vmul.f32 0.5, %v1022_v14  ;;  %2336 = vtanh.f32 %v518_v39  ;;  %v520_v19 = vmul.f32 0.5, %v3677_v46  ;;  %v3704_v6 = vld [vmem:[%s2813_s30 + $0x418] sm:$0xff]  ;;  %v3759_v20 = vld [vmem:[%s2813_s30 + $0x470] sm:$0xff] }
  0xd7   : > { %v2325_v7 = vpop.eup %2324  ;;  %1787 = vst [vmem:[%s3134_s17 + $0x388] sm:$0xff] %v1531_v50  ;;  %v1533_v4 = vmul.f32 %v1277_v8, %v3589_v10  ;;  %v1279_v51 = vmul.f32 0.5, %v1023_v38  ;;  %2338 = vtanh.f32 %v519_v57  ;;  %v521_v62 = vmul.f32 0.5, %v3683_v47  ;;  %v3710_v10 = vld [vmem:[%s2813_s30 + $0x420] sm:$0xff]  ;;  %v3762_v14 = vld [vmem:[%s2813_s30 + $0x478] sm:$0xff] }
  0xd8   : > { %v2327_v5 = vpop.eup %2326  ;;  %1788 = vst [vmem:[%s3134_s17 + $0x390] sm:$0xff] %v1532_v27  ;;  %v1534_v42 = vmul.f32 %v1278_v22, %v3595_v16  ;;  %v1024_v37 = vadd.f32 1.0, %v2325_v7  ;;  %2340 = vtanh.f32 %v520_v19  ;;  %v522_v54 = vmul.f32 0.5, %v3689_v32  ;;  %v3719_v16 = vld [vmem:[%s2813_s30 + $0x430] sm:$0xff]  ;;  %v3767_v57 = vld [vmem:[%s2813_s30 + $0x480] sm:$0xff]  ;;  %v3770_v27 = vld [vmem:[%s2813_s30 + $0x488] sm:$0xff] }
  0xd9   : > { %1789 = vst [vmem:[%s3134_s17 + $0x398] sm:$0xff] %v1533_v4  ;;  %v1535_v15 = vmul.f32 %v1279_v51, %v3600_v44  ;;  %v1025_v60 = vadd.f32 1.0, %v2327_v5  ;;  %2342 = vtanh.f32 %v521_v62  ;;  %v523_v21 = vmul.f32 0.5, %v3695_v17  ;;  %v3775_v4 = vld [vmem:[%s2813_s30 + $0x490] sm:$0xff]  ;;  %v3781_v5 = vld [vmem:[%s2813_s30 + $0x498] sm:$0xff] }
  0xda   : > { %1790 = vst [vmem:[%s3134_s17 + $0x3a0] sm:$0xff] %v1534_v42  ;;  %v1280_v59 = vmul.f32 0.5, %v1024_v37  ;;  %2344 = vtanh.f32 %v522_v54  ;;  %v524_v36 = vmul.f32 0.5, %v3701_v49  ;;  %v525_v12 = vmul.f32 0.5, %v3704_v6 }
  0xdb   : > { %v2329_v44 = vpop.eup %2328  ;;  %1791 = vst [vmem:[%s3134_s17 + $0x3a8] sm:$0xff] %v1535_v15  ;;  %v1281_v31 = vmul.f32 0.5, %v1025_v60  ;;  %2346 = vtanh.f32 %v523_v21  ;;  %v526_v63 = vmul.f32 0.5, %v3710_v10  ;;  %v527_v55 = vmul.f32 0.5, %v3713_v48  ;;  %v3787_v15 = vld [vmem:[%s2813_s30 + $0x4a0] sm:$0xff] }
  0xdc   : > { %v2331_v1 = vpop.eup %2330  ;;  %v1536_v9 = vmul.f32 %v1280_v59, %v3619_v43  ;;  %v1026_v58 = vadd.f32 1.0, %v2329_v44  ;;  %2348 = vtanh.f32 %v524_v36  ;;  %v528_v29 = vmul.f32 0.5, %v3719_v16 }
  0xdd   : > { %v1537_v34 = vmul.f32 %v1281_v31, %v3624_v33  ;;  %v1027_v53 = vadd.f32 1.0, %v2331_v1  ;;  %2350 = vtanh.f32 %v525_v12  ;;  %v529_v3 = vmul.f32 0.5, %v3725_v30  ;;  %v3792_v12 = vld [vmem:[%s2813_s30 + $0x4a8] sm:$0xff] }
  0xde   : > { %1792 = vst [vmem:[%s3134_s17 + $0x3b0] sm:$0xff] %v1536_v9  ;;  %v1282_v43 = vmul.f32 0.5, %v1026_v58  ;;  %2352 = vtanh.f32 %v526_v63  ;;  %v530_v40 = vmul.f32 0.5, %v3731_v52  ;;  %v531_v61 = vmul.f32 0.5, %v3734_v18 }
  0xdf   : > { %v2333_v33 = vpop.eup %2332  ;;  %1793 = vst [vmem:[%s3134_s17 + $0x3b8] sm:$0xff] %v1537_v34  ;;  %v1283_v13 = vmul.f32 0.5, %v1027_v53  ;;  %2354 = vtanh.f32 %v527_v55  ;;  %v532_v23 = vmul.f32 0.5, %v3739_v24  ;;  %v533_v56 = vmul.f32 0.5, %v3742_v28 }
  0xe0   : > { %v2335_v39 = vpop.eup %2334  ;;  %v1538_v50 = vmul.f32 %v1282_v43, %v3635_v2  ;;  %v1028_v8 = vadd.f32 1.0, %v2333_v33  ;;  %2356 = vtanh.f32 %v528_v29  ;;  %v534_v38 = vmul.f32 0.5, %v3747_v26 }
  0xe1   : > { %v1539_v22 = vmul.f32 %v1283_v13, %v3640_v25  ;;  %v1029_v19 = vadd.f32 1.0, %v2335_v39  ;;  %2358 = vtanh.f32 %v529_v3  ;;  %v535_v7 = vmul.f32 0.5, %v3753_v11 }
  0xe2   : > { %1794 = vst [vmem:[%s3134_s17 + $0x3c0] sm:$0xff] %v1538_v50  ;;  %v1284_v2 = vmul.f32 0.5, %v1028_v8  ;;  %2360 = vtanh.f32 %v530_v40  ;;  %v536_v51 = vmul.f32 0.5, %v3759_v20  ;;  %v537_v62 = vmul.f32 0.5, %v3762_v14 }
  0xe3   : > { %v2337_v42 = vpop.eup %2336  ;;  %1795 = vst [vmem:[%s3134_s17 + $0x3c8] sm:$0xff] %v1539_v22  ;;  %v1285_v25 = vmul.f32 0.5, %v1029_v19  ;;  %2362 = vtanh.f32 %v531_v61  ;;  %v538_v37 = vmul.f32 0.5, %v3767_v57  ;;  %v539_v54 = vmul.f32 0.5, %v3770_v27 }
  0xe4   : > { %v2339_v60 = vpop.eup %2338  ;;  %v1540_v21 = vmul.f32 %v1284_v2, %v3651_v41  ;;  %v1030_v59 = vadd.f32 1.0, %v2337_v42  ;;  %2364 = vtanh.f32 %v532_v23  ;;  %v540_v36 = vmul.f32 0.5, %v3775_v4 }
  0xe5   : > { %v2341_v44 = vpop.eup %2340  ;;  %v1541_v31 = vmul.f32 %v1285_v25, %v3656_v0  ;;  %v1031_v63 = vadd.f32 1.0, %v2339_v60  ;;  %2366 = vtanh.f32 %v533_v56  ;;  %v541_v55 = vmul.f32 0.5, %v3781_v5 }
  0xe6   : > { %v2343_v1 = vpop.eup %2342  ;;  %1796 = vst [vmem:[%s3134_s17 + $0x3d0] sm:$0xff] %v1540_v21  ;;  %v1286_v9 = vmul.f32 0.5, %v1030_v59  ;;  %v1032_v58 = vadd.f32 1.0, %v2341_v44  ;;  %2368 = vtanh.f32 %v534_v38  ;;  %v542_v41 = vmul.f32 0.5, %v3787_v15  ;;  %v3816_v59 = vld [vmem:[%s2813_s30 + $0x4b8] sm:$0xff] }
  0xe7   : > { %v2345_v29 = vpop.eup %2344  ;;  %1797 = vst [vmem:[%s3134_s17 + $0x3d8] sm:$0xff] %v1541_v31  ;;  %v1287_v34 = vmul.f32 0.5, %v1031_v63  ;;  %v1033_v53 = vadd.f32 1.0, %v2343_v1  ;;  %2370 = vtanh.f32 %v535_v7  ;;  %v543_v3 = vmul.f32 0.5, %v3792_v12 }
  0xe8   : > { %v2347_v0 = vpop.eup %2346  ;;  %v1542_v43 = vmul.f32 %v1286_v9, %v3667_v35  ;;  %v1288_v40 = vmul.f32 0.5, %v1032_v58  ;;  %v1034_v61 = vadd.f32 1.0, %v2345_v29  ;;  %2372 = vtanh.f32 %v536_v51 }
  0xe9   : > { %v2349_v33 = vpop.eup %2348  ;;  %v1543_v13 = vmul.f32 %v1287_v34, %v3672_v45  ;;  %v1289_v23 = vmul.f32 0.5, %v1033_v53  ;;  %v1035_v56 = vadd.f32 1.0, %v2347_v0  ;;  %2374 = vtanh.f32 %v537_v62  ;;  %v3827_v53 = vld [vmem:[%s2813_s30 + $0x4c0] sm:$0xff] }
  0xea   : > { %v2351_v39 = vpop.eup %2350  ;;  %1798 = vst [vmem:[%s3134_s17 + $0x3e0] sm:$0xff] %v1542_v43  ;;  %v1544_v50 = vmul.f32 %v1288_v40, %v3677_v46  ;;  %v1290_v8 = vmul.f32 0.5, %v1034_v61  ;;  %v1036_v38 = vadd.f32 1.0, %v2349_v33  ;;  %2376 = vtanh.f32 %v538_v37  ;;  %v3811_v37 = vld [vmem:[%s2813_s30 + $0x4b0] sm:$0xff]  ;;  %v3832_v40 = vld [vmem:[%s2813_s30 + $0x4c8] sm:$0xff] }
  0xeb   : > { %v2353_v35 = vpop.eup %2352  ;;  %1799 = vst [vmem:[%s3134_s17 + $0x3e8] sm:$0xff] %v1543_v13  ;;  %v1545_v22 = vmul.f32 %v1289_v23, %v3683_v47  ;;  %v1291_v19 = vmul.f32 0.5, %v1035_v56  ;;  %v1037_v7 = vadd.f32 1.0, %v2351_v39  ;;  %2378 = vtanh.f32 %v539_v54 }
  0xec   : > { %v2355_v45 = vpop.eup %2354  ;;  %1800 = vst [vmem:[%s3134_s17 + $0x3f0] sm:$0xff] %v1544_v50  ;;  %v1546_v2 = vmul.f32 %v1290_v8, %v3689_v32  ;;  %v1292_v51 = vmul.f32 0.5, %v1036_v38  ;;  %v1038_v46 = vadd.f32 1.0, %v2353_v35  ;;  %2380 = vtanh.f32 %v540_v36 }
  0xed   : > { %v2357_v62 = vpop.eup %2356  ;;  %1801 = vst [vmem:[%s3134_s17 + $0x3f8] sm:$0xff] %v1545_v22  ;;  %v1547_v42 = vmul.f32 %v1291_v19, %v3695_v17  ;;  %v1293_v25 = vmul.f32 0.5, %v1037_v7  ;;  %v1039_v47 = vadd.f32 1.0, %v2355_v45  ;;  %2382 = vtanh.f32 %v541_v55  ;;  %v3843_v19 = vld [vmem:[%s2813_s30 + $0x4d0] sm:$0xff] }
  0xee   : > { %v2359_v54 = vpop.eup %2358  ;;  %1802 = vst [vmem:[%s3134_s17 + $0x400] sm:$0xff] %v1546_v2  ;;  %v1548_v60 = vmul.f32 %v1292_v51, %v3701_v49  ;;  %v1294_v32 = vmul.f32 0.5, %v1038_v46  ;;  %v1040_v21 = vadd.f32 1.0, %v2357_v62  ;;  %2384 = vtanh.f32 %v542_v41  ;;  %v3848_v51 = vld [vmem:[%s2813_s30 + $0x4d8] sm:$0xff] }
  0xef   : > { %v2361_v36 = vpop.eup %2360  ;;  %1803 = vst [vmem:[%s3134_s17 + $0x408] sm:$0xff] %v1547_v42  ;;  %v1549_v17 = vmul.f32 %v1293_v25, %v3704_v6  ;;  %v1295_v44 = vmul.f32 0.5, %v1039_v47  ;;  %v1041_v31 = vadd.f32 1.0, %v2359_v54  ;;  %2386 = vtanh.f32 %v543_v3 }
  0xf0   : > { %v2363_v63 = vpop.eup %2362  ;;  %1804 = vst [vmem:[%s3134_s17 + $0x410] sm:$0xff] %v1548_v60  ;;  %v1550_v55 = vmul.f32 %v1294_v32, %v3710_v10  ;;  %v1296_v49 = vmul.f32 0.5, %v1040_v21  ;;  %v1042_v1 = vadd.f32 1.0, %v2361_v36  ;;  %v544_v9 = vmul.f32 0.5, %v3811_v37 }
  0xf1   : > { %v2365_v58 = vpop.eup %2364  ;;  %1805 = vst [vmem:[%s3134_s17 + $0x418] sm:$0xff] %v1549_v17  ;;  %v1551_v41 = vmul.f32 %v1295_v44, %v3713_v48  ;;  %v1297_v6 = vmul.f32 0.5, %v1041_v31  ;;  %v1043_v29 = vadd.f32 1.0, %v2363_v63  ;;  %v545_v34 = vmul.f32 0.5, %v3816_v59  ;;  %v3859_v44 = vld [vmem:[%s2813_s30 + $0x4e0] sm:$0xff] }
  0xf2   : > { %v2367_v3 = vpop.eup %2366  ;;  %1806 = vst [vmem:[%s3134_s17 + $0x420] sm:$0xff] %v1550_v55  ;;  %v1552_v10 = vmul.f32 %v1296_v49, %v3719_v16  ;;  %v1298_v0 = vmul.f32 0.5, %v1042_v1  ;;  %v1044_v43 = vadd.f32 1.0, %v2365_v58  ;;  %2388 = vtanh.f32 %v544_v9  ;;  %v3864_v49 = vld [vmem:[%s2813_s30 + $0x4e8] sm:$0xff] }
  0xf3   : > { %v2369_v61 = vpop.eup %2368  ;;  %1807 = vst [vmem:[%s3134_s17 + $0x428] sm:$0xff] %v1551_v41  ;;  %v1553_v48 = vmul.f32 %v1297_v6, %v3725_v30  ;;  %v1299_v33 = vmul.f32 0.5, %v1043_v29  ;;  %v1045_v13 = vadd.f32 1.0, %v2367_v3  ;;  %2390 = vtanh.f32 %v545_v34  ;;  %v3869_v41 = vld [vmem:[%s2813_s30 + $0x4f0] sm:$0xff] }
  0xf4   : > { %v2371_v23 = vpop.eup %2370  ;;  %1808 = vst [vmem:[%s3134_s17 + $0x430] sm:$0xff] %v1552_v10  ;;  %v1554_v56 = vmul.f32 %v1298_v0, %v3731_v52  ;;  %v1300_v16 = vmul.f32 0.5, %v1044_v43  ;;  %v1046_v39 = vadd.f32 1.0, %v2369_v61  ;;  %v546_v50 = vmul.f32 0.5, %v3827_v53  ;;  %v3875_v10 = vld [vmem:[%s2813_s30 + $0x4f8] sm:$0xff] }
  0xf5   : > { %v2373_v8 = vpop.eup %2372  ;;  %1809 = vst [vmem:[%s3134_s17 + $0x438] sm:$0xff] %v1553_v48  ;;  %v1555_v38 = vmul.f32 %v1299_v33, %v3734_v18  ;;  %v1301_v30 = vmul.f32 0.5, %v1045_v13  ;;  %v1047_v35 = vadd.f32 1.0, %v2371_v23  ;;  %v547_v22 = vmul.f32 0.5, %v3832_v40  ;;  %v3881_v48 = vld [vmem:[%s2813_s30 + $0x500] sm:$0xff]  ;;  %v3887_v23 = vld [vmem:[%s2813_s30 + $0x508] sm:$0xff] }
  0xf6   : > { %v2375_v7 = vpop.eup %2374  ;;  %1810 = vst [vmem:[%s3134_s17 + $0x440] sm:$0xff] %v1554_v56  ;;  %v1556_v52 = vmul.f32 %v1300_v16, %v3739_v24  ;;  %v1302_v45 = vmul.f32 0.5, %v1046_v39  ;;  %v1048_v2 = vadd.f32 1.0, %v2373_v8  ;;  %2392 = vtanh.f32 %v546_v50  ;;  %v3893_v50 = vld [vmem:[%s2813_s30 + $0x510] sm:$0xff] }
  0xf7   : > { %v2377_v46 = vpop.eup %2376  ;;  %1811 = vst [vmem:[%s3134_s17 + $0x448] sm:$0xff] %v1555_v38  ;;  %v1557_v18 = vmul.f32 %v1301_v30, %v3742_v28  ;;  %v1303_v62 = vmul.f32 0.5, %v1047_v35  ;;  %v1049_v42 = vadd.f32 1.0, %v2375_v7  ;;  %2394 = vtanh.f32 %v547_v22  ;;  %v3905_v22 = vld [vmem:[%s2813_s30 + $0x528] sm:$0xff] }
  0xf8   : > { %v2379_v25 = vpop.eup %2378  ;;  %1812 = vst [vmem:[%s3134_s17 + $0x450] sm:$0xff] %v1556_v52  ;;  %v1558_v47 = vmul.f32 %v1302_v45, %v3747_v26  ;;  %v1304_v24 = vmul.f32 0.5, %v1048_v2  ;;  %v1050_v54 = vadd.f32 1.0, %v2377_v46  ;;  %v548_v60 = vmul.f32 0.5, %v3843_v19 }
  0xf9   : > { %v2381_v32 = vpop.eup %2380  ;;  %1813 = vst [vmem:[%s3134_s17 + $0x458] sm:$0xff] %v1557_v18  ;;  %v1559_v21 = vmul.f32 %v1303_v62, %v3753_v11  ;;  %v1305_v28 = vmul.f32 0.5, %v1049_v42  ;;  %v1051_v36 = vadd.f32 1.0, %v2379_v25  ;;  %v549_v17 = vmul.f32 0.5, %v3848_v51  ;;  %v3917_v62 = vld [vmem:[%s2813_s30 + $0x538] sm:$0xff] }
  0xfa   : > { %v2383_v31 = vpop.eup %2382  ;;  %1814 = vst [vmem:[%s3134_s17 + $0x460] sm:$0xff] %v1558_v47  ;;  %v1560_v26 = vmul.f32 %v1304_v24, %v3759_v20  ;;  %v1306_v63 = vmul.f32 0.5, %v1050_v54  ;;  %v1052_v55 = vadd.f32 1.0, %v2381_v32  ;;  %2396 = vtanh.f32 %v548_v60  ;;  %v3923_v24 = vld [vmem:[%s2813_s30 + $0x540] sm:$0xff]  ;;  %v3926_v54 = vld [vmem:[%s2813_s30 + $0x548] sm:$0xff] }
  0xfb   : > { %v2385_v11 = vpop.eup %2384  ;;  %1815 = vst [vmem:[%s3134_s17 + $0x468] sm:$0xff] %v1559_v21  ;;  %v1561_v1 = vmul.f32 %v1305_v28, %v3762_v14  ;;  %v1307_v9 = vmul.f32 0.5, %v1051_v36  ;;  %v1053_v58 = vadd.f32 1.0, %v2383_v31  ;;  %2398 = vtanh.f32 %v549_v17  ;;  %v3931_v36 = vld [vmem:[%s2813_s30 + $0x550] sm:$0xff]  ;;  %v3934_v17 = vld [vmem:[%s2813_s30 + $0x558] sm:$0xff] }
  0xfc   : > { %v2387_v6 = vpop.eup %2386  ;;  %1816 = vst [vmem:[%s3134_s17 + $0x470] sm:$0xff] %v1560_v26  ;;  %v1562_v20 = vmul.f32 %v1306_v63, %v3767_v57  ;;  %v1308_v29 = vmul.f32 0.5, %v1052_v55  ;;  %v1054_v34 = vadd.f32 1.0, %v2385_v11  ;;  %v550_v3 = vmul.f32 0.5, %v3859_v44  ;;  %v3939_v55 = vld [vmem:[%s2813_s30 + $0x560] sm:$0xff] }
  0xfd   : > { %1817 = vst [vmem:[%s3134_s17 + $0x478] sm:$0xff] %v1561_v1  ;;  %v1563_v14 = vmul.f32 %v1307_v9, %v3770_v27  ;;  %v1309_v0 = vmul.f32 0.5, %v1053_v58  ;;  %v1055_v43 = vadd.f32 1.0, %v2387_v6  ;;  %v551_v61 = vmul.f32 0.5, %v3864_v49  ;;  %v3945_v9 = vld [vmem:[%s2813_s30 + $0x568] sm:$0xff] }
  0xfe   : > { %1818 = vst [vmem:[%s3134_s17 + $0x480] sm:$0xff] %v1562_v20  ;;  %v1564_v57 = vmul.f32 %v1308_v29, %v3775_v4  ;;  %v1310_v33 = vmul.f32 0.5, %v1054_v34  ;;  %2400 = vtanh.f32 %v550_v3  ;;  %v552_v13 = vmul.f32 0.5, %v3869_v41  ;;  %v3896_v4 = vld [vmem:[%s2813_s30 + $0x518] sm:$0xff]  ;;  %v3951_v29 = vld [vmem:[%s2813_s30 + $0x570] sm:$0xff] }
  0xff   : > { %v2389_v27 = vpop.eup %2388  ;;  %1819 = vst [vmem:[%s3134_s17 + $0x488] sm:$0xff] %v1563_v14  ;;  %v1565_v56 = vmul.f32 %v1309_v0, %v3781_v5  ;;  %v1311_v16 = vmul.f32 0.5, %v1055_v43  ;;  %2402 = vtanh.f32 %v551_v61  ;;  %v553_v39 = vmul.f32 0.5, %v3875_v10  ;;  %v3902_v5 = vld [vmem:[%s2813_s30 + $0x520] sm:$0xff]  ;;  %v3954_v34 = vld [vmem:[%s2813_s30 + $0x578] sm:$0xff] }
 0x100   : > { %v2391_v8 = vpop.eup %2390  ;;  %1820 = vst [vmem:[%s3134_s17 + $0x490] sm:$0xff] %v1564_v57  ;;  %v1566_v38 = vmul.f32 %v1310_v33, %v3787_v15  ;;  %v1056_v30 = vadd.f32 1.0, %v2389_v27  ;;  %2404 = vtanh.f32 %v552_v13  ;;  %v554_v35 = vmul.f32 0.5, %v3881_v48  ;;  %v3911_v15 = vld [vmem:[%s2813_s30 + $0x530] sm:$0xff]  ;;  %v3959_v61 = vld [vmem:[%s2813_s30 + $0x580] sm:$0xff]  ;;  %v3962_v57 = vld [vmem:[%s2813_s30 + $0x588] sm:$0xff] }
 0x101   : > { %1821 = vst [vmem:[%s3134_s17 + $0x498] sm:$0xff] %v1565_v56  ;;  %v1567_v7 = vmul.f32 %v1311_v16, %v3792_v12  ;;  %v1057_v52 = vadd.f32 1.0, %v2391_v8  ;;  %2406 = vtanh.f32 %v553_v39  ;;  %v555_v45 = vmul.f32 0.5, %v3887_v23  ;;  %v3967_v56 = vld [vmem:[%s2813_s30 + $0x590] sm:$0xff]  ;;  %v3973_v8 = vld [vmem:[%s2813_s30 + $0x598] sm:$0xff] }
 0x102   : > { %1822 = vst [vmem:[%s3134_s17 + $0x4a0] sm:$0xff] %v1566_v38  ;;  %v1312_v2 = vmul.f32 0.5, %v1056_v30  ;;  %2408 = vtanh.f32 %v554_v35  ;;  %v556_v46 = vmul.f32 0.5, %v3893_v50  ;;  %v557_v18 = vmul.f32 0.5, %v3896_v4 }
 0x103   : > { %v2393_v12 = vpop.eup %2392  ;;  %1823 = vst [vmem:[%s3134_s17 + $0x4a8] sm:$0xff] %v1567_v7  ;;  %v1313_v42 = vmul.f32 0.5, %v1057_v52  ;;  %2410 = vtanh.f32 %v555_v45  ;;  %v558_v25 = vmul.f32 0.5, %v3902_v5  ;;  %v559_v47 = vmul.f32 0.5, %v3905_v22  ;;  %v3979_v7 = vld [vmem:[%s2813_s30 + $0x5a0] sm:$0xff] }
 0x104   : > { %v2395_v60 = vpop.eup %2394  ;;  %v1568_v32 = vmul.f32 %v1312_v2, %v3811_v37  ;;  %v1058_v21 = vadd.f32 1.0, %v2393_v12  ;;  %2412 = vtanh.f32 %v556_v46  ;;  %v560_v28 = vmul.f32 0.5, %v3911_v15 }
 0x105   : > { %v1569_v31 = vmul.f32 %v1313_v42, %v3816_v59  ;;  %v1059_v26 = vadd.f32 1.0, %v2395_v60  ;;  %2414 = vtanh.f32 %v557_v18  ;;  %v561_v63 = vmul.f32 0.5, %v3917_v62  ;;  %v3984_v18 = vld [vmem:[%s2813_s30 + $0x5a8] sm:$0xff] }
 0x106   : > { %1824 = vst [vmem:[%s3134_s17 + $0x4b0] sm:$0xff] %v1568_v32  ;;  %v1314_v37 = vmul.f32 0.5, %v1058_v21  ;;  %2416 = vtanh.f32 %v558_v25  ;;  %v562_v11 = vmul.f32 0.5, %v3923_v24  ;;  %v563_v1 = vmul.f32 0.5, %v3926_v54 }
 0x107   : > { %v2397_v59 = vpop.eup %2396  ;;  %1825 = vst [vmem:[%s3134_s17 + $0x4b8] sm:$0xff] %v1569_v31  ;;  %v1315_v58 = vmul.f32 0.5, %v1059_v26  ;;  %2418 = vtanh.f32 %v559_v47  ;;  %v564_v6 = vmul.f32 0.5, %v3931_v36  ;;  %v565_v20 = vmul.f32 0.5, %v3934_v17 }
 0x108   : > { %v2399_v3 = vpop.eup %2398  ;;  %v1570_v14 = vmul.f32 %v1314_v37, %v3827_v53  ;;  %v1060_v0 = vadd.f32 1.0, %v2397_v59  ;;  %2420 = vtanh.f32 %v560_v28  ;;  %v566_v43 = vmul.f32 0.5, %v3939_v55 }
 0x109   : > { %v1571_v33 = vmul.f32 %v1315_v58, %v3832_v40  ;;  %v1061_v13 = vadd.f32 1.0, %v2399_v3  ;;  %2422 = vtanh.f32 %v561_v63  ;;  %v567_v27 = vmul.f32 0.5, %v3945_v9 }
 0x10a   : > { %1826 = vst [vmem:[%s3134_s17 + $0x4c0] sm:$0xff] %v1570_v14  ;;  %v1316_v53 = vmul.f32 0.5, %v1060_v0  ;;  %2424 = vtanh.f32 %v562_v11  ;;  %v568_v16 = vmul.f32 0.5, %v3951_v29  ;;  %v569_v39 = vmul.f32 0.5, %v3954_v34 }
 0x10b   : > { %v2401_v38 = vpop.eup %2400  ;;  %1827 = vst [vmem:[%s3134_s17 + $0x4c8] sm:$0xff] %v1571_v33  ;;  %v1317_v40 = vmul.f32 0.5, %v1061_v13  ;;  %2426 = vtanh.f32 %v563_v1  ;;  %v570_v30 = vmul.f32 0.5, %v3959_v61  ;;  %v571_v35 = vmul.f32 0.5, %v3962_v57 }
 0x10c   : > { %v2403_v52 = vpop.eup %2402  ;;  %v1572_v45 = vmul.f32 %v1316_v53, %v3843_v19  ;;  %v1062_v2 = vadd.f32 1.0, %v2401_v38  ;;  %2428 = vtanh.f32 %v564_v6  ;;  %v572_v46 = vmul.f32 0.5, %v3967_v56 }
 0x10d   : > { %v2405_v12 = vpop.eup %2404  ;;  %v1573_v42 = vmul.f32 %v1317_v40, %v3848_v51  ;;  %v1063_v25 = vadd.f32 1.0, %v2403_v52  ;;  %2430 = vtanh.f32 %v565_v20  ;;  %v573_v47 = vmul.f32 0.5, %v3973_v8 }
 0x10e   : > { %v2407_v60 = vpop.eup %2406  ;;  %1828 = vst [vmem:[%s3134_s17 + $0x4d0] sm:$0xff] %v1572_v45  ;;  %v1318_v32 = vmul.f32 0.5, %v1062_v2  ;;  %v1064_v21 = vadd.f32 1.0, %v2405_v12  ;;  %2432 = vtanh.f32 %v566_v43  ;;  %v574_v19 = vmul.f32 0.5, %v3979_v7  ;;  %v4008_v2 = vld [vmem:[%s2813_s30 + $0x5b8] sm:$0xff] }
 0x10f   : > { %v2409_v28 = vpop.eup %2408  ;;  %1829 = vst [vmem:[%s3134_s17 + $0x4d8] sm:$0xff] %v1573_v42  ;;  %v1319_v31 = vmul.f32 0.5, %v1063_v25  ;;  %v1065_v26 = vadd.f32 1.0, %v2407_v60  ;;  %2434 = vtanh.f32 %v567_v27  ;;  %v575_v63 = vmul.f32 0.5, %v3984_v18 }
 0x110   : > { %v2411_v51 = vpop.eup %2410  ;;  %v1574_v37 = vmul.f32 %v1318_v32, %v3859_v44  ;;  %v1320_v11 = vmul.f32 0.5, %v1064_v21  ;;  %v1066_v1 = vadd.f32 1.0, %v2409_v28  ;;  %2436 = vtanh.f32 %v568_v16 }
 0x111   : > { %v2413_v59 = vpop.eup %2412  ;;  %v1575_v58 = vmul.f32 %v1319_v31, %v3864_v49  ;;  %v1321_v6 = vmul.f32 0.5, %v1065_v26  ;;  %v1067_v20 = vadd.f32 1.0, %v2411_v51  ;;  %2438 = vtanh.f32 %v569_v39  ;;  %v4019_v26 = vld [vmem:[%s2813_s30 + $0x5c0] sm:$0xff] }
 0x112   : > { %v2415_v3 = vpop.eup %2414  ;;  %1830 = vst [vmem:[%s3134_s17 + $0x4e0] sm:$0xff] %v1574_v37  ;;  %v1576_v14 = vmul.f32 %v1320_v11, %v3869_v41  ;;  %v1322_v0 = vmul.f32 0.5, %v1066_v1  ;;  %v1068_v43 = vadd.f32 1.0, %v2413_v59  ;;  %2440 = vtanh.f32 %v570_v30  ;;  %v4003_v30 = vld [vmem:[%s2813_s30 + $0x5b0] sm:$0xff]  ;;  %v4024_v11 = vld [vmem:[%s2813_s30 + $0x5c8] sm:$0xff] }
 0x113   : > { %v2417_v44 = vpop.eup %2416  ;;  %1831 = vst [vmem:[%s3134_s17 + $0x4e8] sm:$0xff] %v1575_v58  ;;  %v1577_v33 = vmul.f32 %v1321_v6, %v3875_v10  ;;  %v1323_v13 = vmul.f32 0.5, %v1067_v20  ;;  %v1069_v27 = vadd.f32 1.0, %v2415_v3  ;;  %2442 = vtanh.f32 %v571_v35 }
 0x114   : > { %v2419_v49 = vpop.eup %2418  ;;  %1832 = vst [vmem:[%s3134_s17 + $0x4f0] sm:$0xff] %v1576_v14  ;;  %v1578_v53 = vmul.f32 %v1322_v0, %v3881_v48  ;;  %v1324_v16 = vmul.f32 0.5, %v1068_v43  ;;  %v1070_v41 = vadd.f32 1.0, %v2417_v44  ;;  %2444 = vtanh.f32 %v572_v46 }
 0x115   : > { %v2421_v39 = vpop.eup %2420  ;;  %1833 = vst [vmem:[%s3134_s17 + $0x4f8] sm:$0xff] %v1577_v33  ;;  %v1579_v38 = vmul.f32 %v1323_v13, %v3887_v23  ;;  %v1325_v40 = vmul.f32 0.5, %v1069_v27  ;;  %v1071_v10 = vadd.f32 1.0, %v2419_v49  ;;  %2446 = vtanh.f32 %v573_v47  ;;  %v4035_v13 = vld [vmem:[%s2813_s30 + $0x5d0] sm:$0xff] }
 0x116   : > { %v2423_v35 = vpop.eup %2422  ;;  %1834 = vst [vmem:[%s3134_s17 + $0x500] sm:$0xff] %v1578_v53  ;;  %v1580_v52 = vmul.f32 %v1324_v16, %v3893_v50  ;;  %v1326_v48 = vmul.f32 0.5, %v1070_v41  ;;  %v1072_v45 = vadd.f32 1.0, %v2421_v39  ;;  %2448 = vtanh.f32 %v574_v19  ;;  %v4040_v16 = vld [vmem:[%s2813_s30 + $0x5d8] sm:$0xff] }
 0x117   : > { %v2425_v46 = vpop.eup %2424  ;;  %1835 = vst [vmem:[%s3134_s17 + $0x508] sm:$0xff] %v1579_v38  ;;  %v1581_v23 = vmul.f32 %v1325_v40, %v3896_v4  ;;  %v1327_v12 = vmul.f32 0.5, %v1071_v10  ;;  %v1073_v42 = vadd.f32 1.0, %v2423_v35  ;;  %2450 = vtanh.f32 %v575_v63 }
 0x118   : > { %v2427_v25 = vpop.eup %2426  ;;  %1836 = vst [vmem:[%s3134_s17 + $0x510] sm:$0xff] %v1580_v52  ;;  %v1582_v47 = vmul.f32 %v1326_v48, %v3902_v5  ;;  %v1328_v50 = vmul.f32 0.5, %v1072_v45  ;;  %v1074_v60 = vadd.f32 1.0, %v2425_v46  ;;  %v576_v32 = vmul.f32 0.5, %v4003_v30 }
 0x119   : > { %v2429_v21 = vpop.eup %2428  ;;  %1837 = vst [vmem:[%s3134_s17 + $0x518] sm:$0xff] %v1581_v23  ;;  %v1583_v19 = vmul.f32 %v1327_v12, %v3905_v22  ;;  %v1329_v4 = vmul.f32 0.5, %v1073_v42  ;;  %v1075_v28 = vadd.f32 1.0, %v2427_v25  ;;  %v577_v31 = vmul.f32 0.5, %v4008_v2  ;;  %v4051_v12 = vld [vmem:[%s2813_s30 + $0x5e0] sm:$0xff] }
 0x11a   : > { %v2431_v63 = vpop.eup %2430  ;;  %1838 = vst [vmem:[%s3134_s17 + $0x520] sm:$0xff] %v1582_v47  ;;  %v1584_v5 = vmul.f32 %v1328_v50, %v3911_v15  ;;  %v1330_v51 = vmul.f32 0.5, %v1074_v60  ;;  %v1076_v37 = vadd.f32 1.0, %v2429_v21  ;;  %2452 = vtanh.f32 %v576_v32  ;;  %v4056_v50 = vld [vmem:[%s2813_s30 + $0x5e8] sm:$0xff] }
 0x11b   : > { %v2433_v1 = vpop.eup %2432  ;;  %1839 = vst [vmem:[%s3134_s17 + $0x528] sm:$0xff] %v1583_v19  ;;  %v1585_v22 = vmul.f32 %v1329_v4, %v3917_v62  ;;  %v1331_v59 = vmul.f32 0.5, %v1075_v28  ;;  %v1077_v58 = vadd.f32 1.0, %v2431_v63  ;;  %2454 = vtanh.f32 %v577_v31  ;;  %v4061_v19 = vld [vmem:[%s2813_s30 + $0x5f0] sm:$0xff] }
 0x11c   : > { %v2435_v6 = vpop.eup %2434  ;;  %1840 = vst [vmem:[%s3134_s17 + $0x530] sm:$0xff] %v1584_v5  ;;  %v1586_v20 = vmul.f32 %v1330_v51, %v3923_v24  ;;  %v1332_v15 = vmul.f32 0.5, %v1076_v37  ;;  %v1078_v3 = vadd.f32 1.0, %v2433_v1  ;;  %v578_v14 = vmul.f32 0.5, %v4019_v26  ;;  %v4067_v5 = vld [vmem:[%s2813_s30 + $0x5f8] sm:$0xff] }
 0x11d   : > { %v2437_v0 = vpop.eup %2436  ;;  %1841 = vst [vmem:[%s3134_s17 + $0x538] sm:$0xff] %v1585_v22  ;;  %v1587_v43 = vmul.f32 %v1331_v59, %v3926_v54  ;;  %v1333_v62 = vmul.f32 0.5, %v1077_v58  ;;  %v1079_v44 = vadd.f32 1.0, %v2435_v6  ;;  %v579_v33 = vmul.f32 0.5, %v4024_v11  ;;  %v4073_v22 = vld [vmem:[%s2813_s30 + $0x600] sm:$0xff]  ;;  %v4079_v6 = vld [vmem:[%s2813_s30 + $0x608] sm:$0xff] }
 0x11e   : > { %v2439_v27 = vpop.eup %2438  ;;  %1842 = vst [vmem:[%s3134_s17 + $0x540] sm:$0xff] %v1586_v20  ;;  %v1588_v24 = vmul.f32 %v1332_v15, %v3931_v36  ;;  %v1334_v49 = vmul.f32 0.5, %v1078_v3  ;;  %v1080_v53 = vadd.f32 1.0, %v2437_v0  ;;  %2456 = vtanh.f32 %v578_v14  ;;  %v4085_v14 = vld [vmem:[%s2813_s30 + $0x610] sm:$0xff] }
 0x11f   : > { %v2441_v41 = vpop.eup %2440  ;;  %1843 = vst [vmem:[%s3134_s17 + $0x548] sm:$0xff] %v1587_v43  ;;  %v1589_v54 = vmul.f32 %v1333_v62, %v3934_v17  ;;  %v1335_v39 = vmul.f32 0.5, %v1079_v44  ;;  %v1081_v38 = vadd.f32 1.0, %v2439_v27  ;;  %2458 = vtanh.f32 %v579_v33  ;;  %v4097_v33 = vld [vmem:[%s2813_s30 + $0x628] sm:$0xff] }
 0x120   : > { %v2443_v40 = vpop.eup %2442  ;;  %1844 = vst [vmem:[%s3134_s17 + $0x550] sm:$0xff] %v1588_v24  ;;  %v1590_v10 = vmul.f32 %v1334_v49, %v3939_v55  ;;  %v1336_v36 = vmul.f32 0.5, %v1080_v53  ;;  %v1082_v35 = vadd.f32 1.0, %v2441_v41  ;;  %v580_v52 = vmul.f32 0.5, %v4035_v13 }
 0x121   : > { %v2445_v48 = vpop.eup %2444  ;;  %1845 = vst [vmem:[%s3134_s17 + $0x558] sm:$0xff] %v1589_v54  ;;  %v1591_v45 = vmul.f32 %v1335_v39, %v3945_v9  ;;  %v1337_v17 = vmul.f32 0.5, %v1081_v38  ;;  %v1083_v46 = vadd.f32 1.0, %v2443_v40  ;;  %v581_v23 = vmul.f32 0.5, %v4040_v16  ;;  %v4109_v39 = vld [vmem:[%s2813_s30 + $0x638] sm:$0xff] }
 0x122   : > { %v2447_v42 = vpop.eup %2446  ;;  %1846 = vst [vmem:[%s3134_s17 + $0x560] sm:$0xff] %v1590_v10  ;;  %v1592_v55 = vmul.f32 %v1336_v36, %v3951_v29  ;;  %v1338_v25 = vmul.f32 0.5, %v1082_v35  ;;  %v1084_v47 = vadd.f32 1.0, %v2445_v48  ;;  %2460 = vtanh.f32 %v580_v52  ;;  %v4115_v36 = vld [vmem:[%s2813_s30 + $0x640] sm:$0xff]  ;;  %v4118_v35 = vld [vmem:[%s2813_s30 + $0x648] sm:$0xff] }
 0x123   : > { %v2449_v9 = vpop.eup %2448  ;;  %1847 = vst [vmem:[%s3134_s17 + $0x568] sm:$0xff] %v1591_v45  ;;  %v1593_v60 = vmul.f32 %v1337_v17, %v3954_v34  ;;  %v1339_v32 = vmul.f32 0.5, %v1083_v46  ;;  %v1085_v21 = vadd.f32 1.0, %v2447_v42  ;;  %2462 = vtanh.f32 %v581_v23  ;;  %v4123_v46 = vld [vmem:[%s2813_s30 + $0x650] sm:$0xff]  ;;  %v4126_v23 = vld [vmem:[%s2813_s30 + $0x658] sm:$0xff] }
 0x124   : > { %v2451_v4 = vpop.eup %2450  ;;  %1848 = vst [vmem:[%s3134_s17 + $0x570] sm:$0xff] %v1592_v55  ;;  %v1594_v29 = vmul.f32 %v1338_v25, %v3959_v61  ;;  %v1340_v28 = vmul.f32 0.5, %v1084_v47  ;;  %v1086_v31 = vadd.f32 1.0, %v2449_v9  ;;  %v582_v63 = vmul.f32 0.5, %v4051_v12  ;;  %v4131_v47 = vld [vmem:[%s2813_s30 + $0x660] sm:$0xff] }
 0x125   : > { %1849 = vst [vmem:[%s3134_s17 + $0x578] sm:$0xff] %v1593_v60  ;;  %v1595_v34 = vmul.f32 %v1339_v32, %v3962_v57  ;;  %v1341_v51 = vmul.f32 0.5, %v1085_v21  ;;  %v1087_v37 = vadd.f32 1.0, %v2451_v4  ;;  %v583_v1 = vmul.f32 0.5, %v4056_v50  ;;  %v4137_v32 = vld [vmem:[%s2813_s30 + $0x668] sm:$0xff] }
 0x126   : > { %1850 = vst [vmem:[%s3134_s17 + $0x580] sm:$0xff] %v1594_v29  ;;  %v1596_v61 = vmul.f32 %v1340_v28, %v3967_v56  ;;  %v1342_v59 = vmul.f32 0.5, %v1086_v31  ;;  %2464 = vtanh.f32 %v582_v63  ;;  %v584_v58 = vmul.f32 0.5, %v4061_v19  ;;  %v4088_v56 = vld [vmem:[%s2813_s30 + $0x618] sm:$0xff]  ;;  %v4143_v28 = vld [vmem:[%s2813_s30 + $0x670] sm:$0xff] }
 0x127   : > { %v2453_v57 = vpop.eup %2452  ;;  %1851 = vst [vmem:[%s3134_s17 + $0x588] sm:$0xff] %v1595_v34  ;;  %v1597_v20 = vmul.f32 %v1341_v51, %v3973_v8  ;;  %v1343_v15 = vmul.f32 0.5, %v1087_v37  ;;  %2466 = vtanh.f32 %v583_v1  ;;  %v585_v3 = vmul.f32 0.5, %v4067_v5  ;;  %v4094_v8 = vld [vmem:[%s2813_s30 + $0x620] sm:$0xff]  ;;  %v4146_v31 = vld [vmem:[%s2813_s30 + $0x678] sm:$0xff] }
 0x128   : > { %v2455_v0 = vpop.eup %2454  ;;  %1852 = vst [vmem:[%s3134_s17 + $0x590] sm:$0xff] %v1596_v61  ;;  %v1598_v43 = vmul.f32 %v1342_v59, %v3979_v7  ;;  %v1088_v62 = vadd.f32 1.0, %v2453_v57  ;;  %2468 = vtanh.f32 %v584_v58  ;;  %v586_v44 = vmul.f32 0.5, %v4073_v22  ;;  %v4103_v7 = vld [vmem:[%s2813_s30 + $0x630] sm:$0xff]  ;;  %v4151_v1 = vld [vmem:[%s2813_s30 + $0x680] sm:$0xff]  ;;  %v4154_v61 = vld [vmem:[%s2813_s30 + $0x688] sm:$0xff] }
 0x129   : > { %1853 = vst [vmem:[%s3134_s17 + $0x598] sm:$0xff] %v1597_v20  ;;  %v1599_v27 = vmul.f32 %v1343_v15, %v3984_v18  ;;  %v1089_v24 = vadd.f32 1.0, %v2455_v0  ;;  %2470 = vtanh.f32 %v585_v3  ;;  %v587_v49 = vmul.f32 0.5, %v4079_v6  ;;  %v4159_v20 = vld [vmem:[%s2813_s30 + $0x690] sm:$0xff]  ;;  %v4165_v0 = vld [vmem:[%s2813_s30 + $0x698] sm:$0xff] }
 0x12a   : > { %1854 = vst [vmem:[%s3134_s17 + $0x5a0] sm:$0xff] %v1598_v43  ;;  %v1344_v53 = vmul.f32 0.5, %v1088_v62  ;;  %2472 = vtanh.f32 %v586_v44  ;;  %v588_v41 = vmul.f32 0.5, %v4085_v14  ;;  %v589_v54 = vmul.f32 0.5, %v4088_v56 }
 0x12b   : > { %v2457_v18 = vpop.eup %2456  ;;  %1855 = vst [vmem:[%s3134_s17 + $0x5a8] sm:$0xff] %v1599_v27  ;;  %v1345_v38 = vmul.f32 0.5, %v1089_v24  ;;  %2474 = vtanh.f32 %v587_v49  ;;  %v590_v40 = vmul.f32 0.5, %v4094_v8  ;;  %v591_v10 = vmul.f32 0.5, %v4097_v33  ;;  %v4171_v27 = vld [vmem:[%s2813_s30 + $0x6a0] sm:$0xff] }
 0x12c   : > { %v2459_v52 = vpop.eup %2458  ;;  %v1600_v48 = vmul.f32 %v1344_v53, %v4003_v30  ;;  %v1090_v45 = vadd.f32 1.0, %v2457_v18  ;;  %2476 = vtanh.f32 %v588_v41  ;;  %v592_v17 = vmul.f32 0.5, %v4103_v7 }
 0x12d   : > { %v1601_v42 = vmul.f32 %v1345_v38, %v4008_v2  ;;  %v1091_v55 = vadd.f32 1.0, %v2459_v52  ;;  %2478 = vtanh.f32 %v589_v54  ;;  %v593_v25 = vmul.f32 0.5, %v4109_v39  ;;  %v4176_v54 = vld [vmem:[%s2813_s30 + $0x6a8] sm:$0xff] }
 0x12e   : > { %1856 = vst [vmem:[%s3134_s17 + $0x5b0] sm:$0xff] %v1600_v48  ;;  %v1346_v30 = vmul.f32 0.5, %v1090_v45  ;;  %2480 = vtanh.f32 %v590_v40  ;;  %v594_v9 = vmul.f32 0.5, %v4115_v36  ;;  %v595_v60 = vmul.f32 0.5, %v4118_v35 }
 0x12f   : > { %v2461_v2 = vpop.eup %2460  ;;  %1857 = vst [vmem:[%s3134_s17 + $0x5b8] sm:$0xff] %v1601_v42  ;;  %v1347_v21 = vmul.f32 0.5, %v1091_v55  ;;  %2482 = vtanh.f32 %v591_v10  ;;  %v596_v4 = vmul.f32 0.5, %v4123_v46  ;;  %v597_v29 = vmul.f32 0.5, %v4126_v23 }
 0x130   : > { %v2463_v63 = vpop.eup %2462  ;;  %v1602_v34 = vmul.f32 %v1346_v30, %v4019_v26  ;;  %v1092_v51 = vadd.f32 1.0, %v2461_v2  ;;  %2484 = vtanh.f32 %v592_v17  ;;  %v598_v37 = vmul.f32 0.5, %v4131_v47 }
 0x131   : > { %v1603_v59 = vmul.f32 %v1347_v21, %v4024_v11  ;;  %v1093_v58 = vadd.f32 1.0, %v2463_v63  ;;  %2486 = vtanh.f32 %v593_v25  ;;  %v599_v57 = vmul.f32 0.5, %v4137_v32 }
 0x132   : > { %1858 = vst [vmem:[%s3134_s17 + $0x5c0] sm:$0xff] %v1602_v34  ;;  %v1348_v26 = vmul.f32 0.5, %v1092_v51  ;;  %2488 = vtanh.f32 %v594_v9  ;;  %v600_v15 = vmul.f32 0.5, %v4143_v28  ;;  %v601_v3 = vmul.f32 0.5, %v4146_v31 }
 0x133   : > { %v2465_v43 = vpop.eup %2464  ;;  %1859 = vst [vmem:[%s3134_s17 + $0x5c8] sm:$0xff] %v1603_v59  ;;  %v1349_v11 = vmul.f32 0.5, %v1093_v58  ;;  %2490 = vtanh.f32 %v595_v60  ;;  %v602_v62 = vmul.f32 0.5, %v4151_v1  ;;  %v603_v44 = vmul.f32 0.5, %v4154_v61 }
 0x134   : > { %v2467_v24 = vpop.eup %2466  ;;  %v1604_v49 = vmul.f32 %v1348_v26, %v4035_v13  ;;  %v1094_v53 = vadd.f32 1.0, %v2465_v43  ;;  %2492 = vtanh.f32 %v596_v4  ;;  %v604_v41 = vmul.f32 0.5, %v4159_v20 }
 0x135   : > { %v2469_v18 = vpop.eup %2468  ;;  %v1605_v38 = vmul.f32 %v1349_v11, %v4040_v16  ;;  %v1095_v40 = vadd.f32 1.0, %v2467_v24  ;;  %2494 = vtanh.f32 %v597_v29  ;;  %v605_v10 = vmul.f32 0.5, %v4165_v0 }
 0x136   : > { %v2471_v52 = vpop.eup %2470  ;;  %1860 = vst [vmem:[%s3134_s17 + $0x5d0] sm:$0xff] %v1604_v49  ;;  %v1350_v48 = vmul.f32 0.5, %v1094_v53  ;;  %v1096_v45 = vadd.f32 1.0, %v2469_v18  ;;  %2496 = vtanh.f32 %v598_v37  ;;  %v606_v13 = vmul.f32 0.5, %v4171_v27  ;;  %v4200_v53 = vld [vmem:[%s2813_s30 + $0x6b8] sm:$0xff] }
 0x137   : > { %v2473_v17 = vpop.eup %2472  ;;  %1861 = vst [vmem:[%s3134_s17 + $0x5d8] sm:$0xff] %v1605_v38  ;;  %v1351_v42 = vmul.f32 0.5, %v1095_v40  ;;  %v1097_v55 = vadd.f32 1.0, %v2471_v52  ;;  %2498 = vtanh.f32 %v599_v57  ;;  %v607_v25 = vmul.f32 0.5, %v4176_v54 }
 0x138   : > { %v2475_v16 = vpop.eup %2474  ;;  %v1606_v30 = vmul.f32 %v1350_v48, %v4051_v12  ;;  %v1352_v9 = vmul.f32 0.5, %v1096_v45  ;;  %v1098_v60 = vadd.f32 1.0, %v2473_v17  ;;  %2500 = vtanh.f32 %v600_v15 }
 0x139   : > { %v2477_v2 = vpop.eup %2476  ;;  %v1607_v21 = vmul.f32 %v1351_v42, %v4056_v50  ;;  %v1353_v4 = vmul.f32 0.5, %v1097_v55  ;;  %v1099_v29 = vadd.f32 1.0, %v2475_v16  ;;  %2502 = vtanh.f32 %v601_v3  ;;  %v4211_v55 = vld [vmem:[%s2813_s30 + $0x6c0] sm:$0xff] }
 0x13a   : > { %v2479_v63 = vpop.eup %2478  ;;  %1862 = vst [vmem:[%s3134_s17 + $0x5e0] sm:$0xff] %v1606_v30  ;;  %v1608_v34 = vmul.f32 %v1352_v9, %v4061_v19  ;;  %v1354_v51 = vmul.f32 0.5, %v1098_v60  ;;  %v1100_v37 = vadd.f32 1.0, %v2477_v2  ;;  %2504 = vtanh.f32 %v602_v62  ;;  %v4195_v62 = vld [vmem:[%s2813_s30 + $0x6b0] sm:$0xff]  ;;  %v4216_v9 = vld [vmem:[%s2813_s30 + $0x6c8] sm:$0xff] }
 0x13b   : > { %v2481_v12 = vpop.eup %2480  ;;  %1863 = vst [vmem:[%s3134_s17 + $0x5e8] sm:$0xff] %v1607_v21  ;;  %v1609_v59 = vmul.f32 %v1353_v4, %v4067_v5  ;;  %v1355_v58 = vmul.f32 0.5, %v1099_v29  ;;  %v1101_v57 = vadd.f32 1.0, %v2479_v63  ;;  %2506 = vtanh.f32 %v603_v44 }
 0x13c   : > { %v2483_v50 = vpop.eup %2482  ;;  %1864 = vst [vmem:[%s3134_s17 + $0x5f0] sm:$0xff] %v1608_v34  ;;  %v1610_v26 = vmul.f32 %v1354_v51, %v4073_v22  ;;  %v1356_v15 = vmul.f32 0.5, %v1100_v37  ;;  %v1102_v19 = vadd.f32 1.0, %v2481_v12  ;;  %2508 = vtanh.f32 %v604_v41 }
 0x13d   : > { %v2485_v3 = vpop.eup %2484  ;;  %1865 = vst [vmem:[%s3134_s17 + $0x5f8] sm:$0xff] %v1609_v59  ;;  %v1611_v43 = vmul.f32 %v1355_v58, %v4079_v6  ;;  %v1357_v11 = vmul.f32 0.5, %v1101_v57  ;;  %v1103_v5 = vadd.f32 1.0, %v2483_v50  ;;  %2510 = vtanh.f32 %v605_v10  ;;  %v4227_v58 = vld [vmem:[%s2813_s30 + $0x6d0] sm:$0xff] }
 0x13e   : > { %v2487_v44 = vpop.eup %2486  ;;  %1866 = vst [vmem:[%s3134_s17 + $0x600] sm:$0xff] %v1610_v26  ;;  %v1612_v24 = vmul.f32 %v1356_v15, %v4085_v14  ;;  %v1358_v22 = vmul.f32 0.5, %v1102_v19  ;;  %v1104_v49 = vadd.f32 1.0, %v2485_v3  ;;  %2512 = vtanh.f32 %v606_v13  ;;  %v4232_v15 = vld [vmem:[%s2813_s30 + $0x6d8] sm:$0xff] }
 0x13f   : > { %v2489_v41 = vpop.eup %2488  ;;  %1867 = vst [vmem:[%s3134_s17 + $0x608] sm:$0xff] %v1611_v43  ;;  %v1613_v6 = vmul.f32 %v1357_v11, %v4088_v56  ;;  %v1359_v18 = vmul.f32 0.5, %v1103_v5  ;;  %v1105_v38 = vadd.f32 1.0, %v2487_v44  ;;  %2514 = vtanh.f32 %v607_v25 }
 0x140   : > { %v2491_v40 = vpop.eup %2490  ;;  %1868 = vst [vmem:[%s3134_s17 + $0x610] sm:$0xff] %v1612_v24  ;;  %v1614_v10 = vmul.f32 %v1358_v22, %v4094_v8  ;;  %v1360_v14 = vmul.f32 0.5, %v1104_v49  ;;  %v1106_v52 = vadd.f32 1.0, %v2489_v41  ;;  %v608_v48 = vmul.f32 0.5, %v4195_v62 }
 0x141   : > { %v2493_v45 = vpop.eup %2492  ;;  %1869 = vst [vmem:[%s3134_s17 + $0x618] sm:$0xff] %v1613_v6  ;;  %v1615_v13 = vmul.f32 %v1359_v18, %v4097_v33  ;;  %v1361_v56 = vmul.f32 0.5, %v1105_v38  ;;  %v1107_v17 = vadd.f32 1.0, %v2491_v40  ;;  %v609_v42 = vmul.f32 0.5, %v4200_v53  ;;  %v4243_v18 = vld [vmem:[%s2813_s30 + $0x6e0] sm:$0xff] }
 0x142   : > { %v2495_v25 = vpop.eup %2494  ;;  %1870 = vst [vmem:[%s3134_s17 + $0x620] sm:$0xff] %v1614_v10  ;;  %v1616_v8 = vmul.f32 %v1360_v14, %v4103_v7  ;;  %v1362_v16 = vmul.f32 0.5, %v1106_v52  ;;  %v1108_v30 = vadd.f32 1.0, %v2493_v45  ;;  %2516 = vtanh.f32 %v608_v48  ;;  %v4248_v14 = vld [vmem:[%s2813_s30 + $0x6e8] sm:$0xff] }
 0x143   : > { %v2497_v60 = vpop.eup %2496  ;;  %1871 = vst [vmem:[%s3134_s17 + $0x628] sm:$0xff] %v1615_v13  ;;  %v1617_v33 = vmul.f32 %v1361_v56, %v4109_v39  ;;  %v1363_v2 = vmul.f32 0.5, %v1107_v17  ;;  %v1109_v21 = vadd.f32 1.0, %v2495_v25  ;;  %2518 = vtanh.f32 %v609_v42  ;;  %v4253_v13 = vld [vmem:[%s2813_s30 + $0x6f0] sm:$0xff] }
 0x144   : > { %v2499_v4 = vpop.eup %2498  ;;  %1872 = vst [vmem:[%s3134_s17 + $0x630] sm:$0xff] %v1616_v8  ;;  %v1618_v29 = vmul.f32 %v1362_v16, %v4115_v36  ;;  %v1364_v7 = vmul.f32 0.5, %v1108_v30  ;;  %v1110_v63 = vadd.f32 1.0, %v2497_v60  ;;  %v610_v34 = vmul.f32 0.5, %v4211_v55  ;;  %v4259_v8 = vld [vmem:[%s2813_s30 + $0x6f8] sm:$0xff] }
 0x145   : > { %v2501_v51 = vpop.eup %2500  ;;  %1873 = vst [vmem:[%s3134_s17 + $0x638] sm:$0xff] %v1617_v33  ;;  %v1619_v37 = vmul.f32 %v1363_v2, %v4118_v35  ;;  %v1365_v39 = vmul.f32 0.5, %v1109_v21  ;;  %v1111_v12 = vadd.f32 1.0, %v2499_v4  ;;  %v611_v59 = vmul.f32 0.5, %v4216_v9  ;;  %v4265_v33 = vld [vmem:[%s2813_s30 + $0x700] sm:$0xff]  ;;  %v4271_v4 = vld [vmem:[%s2813_s30 + $0x708] sm:$0xff] }
 0x146   : > { %v2503_v57 = vpop.eup %2502  ;;  %1874 = vst [vmem:[%s3134_s17 + $0x640] sm:$0xff] %v1618_v29  ;;  %v1620_v36 = vmul.f32 %v1364_v7, %v4123_v46  ;;  %v1366_v50 = vmul.f32 0.5, %v1110_v63  ;;  %v1112_v26 = vadd.f32 1.0, %v2501_v51  ;;  %2520 = vtanh.f32 %v610_v34  ;;  %v4277_v34 = vld [vmem:[%s2813_s30 + $0x710] sm:$0xff] }
 0x147   : > { %v2505_v19 = vpop.eup %2504  ;;  %1875 = vst [vmem:[%s3134_s17 + $0x648] sm:$0xff] %v1619_v37  ;;  %v1621_v35 = vmul.f32 %v1365_v39, %v4126_v23  ;;  %v1367_v3 = vmul.f32 0.5, %v1111_v12  ;;  %v1113_v43 = vadd.f32 1.0, %v2503_v57  ;;  %2522 = vtanh.f32 %v611_v59  ;;  %v4289_v59 = vld [vmem:[%s2813_s30 + $0x728] sm:$0xff] }
 0x148   : > { %v2507_v11 = vpop.eup %2506  ;;  %1876 = vst [vmem:[%s3134_s17 + $0x650] sm:$0xff] %v1620_v36  ;;  %v1622_v5 = vmul.f32 %v1366_v50, %v4131_v47  ;;  %v1368_v46 = vmul.f32 0.5, %v1112_v26  ;;  %v1114_v44 = vadd.f32 1.0, %v2505_v19  ;;  %v612_v24 = vmul.f32 0.5, %v4227_v58 }
 0x149   : > { %v2509_v22 = vpop.eup %2508  ;;  %1877 = vst [vmem:[%s3134_s17 + $0x658] sm:$0xff] %v1621_v35  ;;  %v1623_v49 = vmul.f32 %v1367_v3, %v4137_v32  ;;  %v1369_v23 = vmul.f32 0.5, %v1113_v43  ;;  %v1115_v41 = vadd.f32 1.0, %v2507_v11  ;;  %v613_v6 = vmul.f32 0.5, %v4232_v15  ;;  %v4301_v3 = vld [vmem:[%s2813_s30 + $0x738] sm:$0xff] }
 0x14a   : > { %v2511_v38 = vpop.eup %2510  ;;  %1878 = vst [vmem:[%s3134_s17 + $0x660] sm:$0xff] %v1622_v5  ;;  %v1624_v47 = vmul.f32 %v1368_v46, %v4143_v28  ;;  %v1370_v40 = vmul.f32 0.5, %v1114_v44  ;;  %v1116_v10 = vadd.f32 1.0, %v2509_v22  ;;  %2524 = vtanh.f32 %v612_v24  ;;  %v4307_v46 = vld [vmem:[%s2813_s30 + $0x740] sm:$0xff]  ;;  %v4310_v44 = vld [vmem:[%s2813_s30 + $0x748] sm:$0xff] }
 0x14b   : > { %v2513_v32 = vpop.eup %2512  ;;  %1879 = vst [vmem:[%s3134_s17 + $0x668] sm:$0xff] %v1623_v49  ;;  %v1625_v52 = vmul.f32 %v1369_v23, %v4146_v31  ;;  %v1371_v48 = vmul.f32 0.5, %v1115_v41  ;;  %v1117_v45 = vadd.f32 1.0, %v2511_v38  ;;  %2526 = vtanh.f32 %v613_v6  ;;  %v4315_v41 = vld [vmem:[%s2813_s30 + $0x750] sm:$0xff]  ;;  %v4318_v6 = vld [vmem:[%s2813_s30 + $0x758] sm:$0xff] }
 0x14c   : > { %v2515_v56 = vpop.eup %2514  ;;  %1880 = vst [vmem:[%s3134_s17 + $0x670] sm:$0xff] %v1624_v47  ;;  %v1626_v28 = vmul.f32 %v1370_v40, %v4151_v1  ;;  %v1372_v17 = vmul.f32 0.5, %v1116_v10  ;;  %v1118_v42 = vadd.f32 1.0, %v2513_v32  ;;  %v614_v25 = vmul.f32 0.5, %v4243_v18  ;;  %v4323_v10 = vld [vmem:[%s2813_s30 + $0x760] sm:$0xff] }
 0x14d   : > { %1881 = vst [vmem:[%s3134_s17 + $0x678] sm:$0xff] %v1625_v52  ;;  %v1627_v31 = vmul.f32 %v1371_v48, %v4154_v61  ;;  %v1373_v16 = vmul.f32 0.5, %v1117_v45  ;;  %v1119_v30 = vadd.f32 1.0, %v2515_v56  ;;  %v615_v60 = vmul.f32 0.5, %v4248_v14  ;;  %v4329_v48 = vld [vmem:[%s2813_s30 + $0x768] sm:$0xff] }
 0x14e   : > { %1882 = vst [vmem:[%s3134_s17 + $0x680] sm:$0xff] %v1626_v28  ;;  %v1628_v1 = vmul.f32 %v1372_v17, %v4159_v20  ;;  %v1374_v2 = vmul.f32 0.5, %v1118_v42  ;;  %2528 = vtanh.f32 %v614_v25  ;;  %v616_v21 = vmul.f32 0.5, %v4253_v13  ;;  %v4280_v20 = vld [vmem:[%s2813_s30 + $0x718] sm:$0xff]  ;;  %v4335_v17 = vld [vmem:[%s2813_s30 + $0x770] sm:$0xff] }
 0x14f   : > { %v2517_v61 = vpop.eup %2516  ;;  %1883 = vst [vmem:[%s3134_s17 + $0x688] sm:$0xff] %v1627_v31  ;;  %v1629_v29 = vmul.f32 %v1373_v16, %v4165_v0  ;;  %v1375_v7 = vmul.f32 0.5, %v1119_v30  ;;  %2530 = vtanh.f32 %v615_v60  ;;  %v617_v63 = vmul.f32 0.5, %v4259_v8  ;;  %v4286_v0 = vld [vmem:[%s2813_s30 + $0x720] sm:$0xff]  ;;  %v4338_v42 = vld [vmem:[%s2813_s30 + $0x778] sm:$0xff] }
 0x150   : > { %v2519_v51 = vpop.eup %2518  ;;  %1884 = vst [vmem:[%s3134_s17 + $0x690] sm:$0xff] %v1628_v1  ;;  %v1630_v37 = vmul.f32 %v1374_v2, %v4171_v27  ;;  %v1120_v39 = vadd.f32 1.0, %v2517_v61  ;;  %2532 = vtanh.f32 %v616_v21  ;;  %v618_v12 = vmul.f32 0.5, %v4265_v33  ;;  %v4295_v27 = vld [vmem:[%s2813_s30 + $0x730] sm:$0xff]  ;;  %v4343_v60 = vld [vmem:[%s2813_s30 + $0x780] sm:$0xff]  ;;  %v4346_v1 = vld [vmem:[%s2813_s30 + $0x788] sm:$0xff] }
 0x151   : > { %1885 = vst [vmem:[%s3134_s17 + $0x698] sm:$0xff] %v1629_v29  ;;  %v1631_v57 = vmul.f32 %v1375_v7, %v4176_v54  ;;  %v1121_v36 = vadd.f32 1.0, %v2519_v51  ;;  %2534 = vtanh.f32 %v617_v63  ;;  %v619_v50 = vmul.f32 0.5, %v4271_v4  ;;  %v4351_v29 = vld [vmem:[%s2813_s30 + $0x790] sm:$0xff]  ;;  %v4357_v51 = vld [vmem:[%s2813_s30 + $0x798] sm:$0xff] }
 0x152   : > { %1886 = vst [vmem:[%s3134_s17 + $0x6a0] sm:$0xff] %v1630_v37  ;;  %v1376_v26 = vmul.f32 0.5, %v1120_v39  ;;  %2536 = vtanh.f32 %v618_v12  ;;  %v620_v19 = vmul.f32 0.5, %v4277_v34  ;;  %v621_v35 = vmul.f32 0.5, %v4280_v20 }
 0x153   : > { %v2521_v54 = vpop.eup %2520  ;;  %1887 = vst [vmem:[%s3134_s17 + $0x6a8] sm:$0xff] %v1631_v57  ;;  %v1377_v43 = vmul.f32 0.5, %v1121_v36  ;;  %2538 = vtanh.f32 %v619_v50  ;;  %v622_v11 = vmul.f32 0.5, %v4286_v0  ;;  %v623_v5 = vmul.f32 0.5, %v4289_v59  ;;  %v4363_v57 = vld [vmem:[%s2813_s30 + $0x7a0] sm:$0xff] }
 0x154   : > { %v2523_v24 = vpop.eup %2522  ;;  %v1632_v22 = vmul.f32 %v1376_v26, %v4195_v62  ;;  %v1122_v49 = vadd.f32 1.0, %v2521_v54  ;;  %2540 = vtanh.f32 %v620_v19  ;;  %v624_v23 = vmul.f32 0.5, %v4295_v27 }
 0x155   : > { %v1633_v38 = vmul.f32 %v1377_v43, %v4200_v53  ;;  %v1123_v47 = vadd.f32 1.0, %v2523_v24  ;;  %2542 = vtanh.f32 %v621_v35  ;;  %v625_v40 = vmul.f32 0.5, %v4301_v3  ;;  %v4368_v35 = vld [vmem:[%s2813_s30 + $0x7a8] sm:$0xff] }
 0x156   : > { %1888 = vst [vmem:[%s3134_s17 + $0x6b0] sm:$0xff] %v1632_v22  ;;  %v1378_v62 = vmul.f32 0.5, %v1122_v49  ;;  %2544 = vtanh.f32 %v622_v11  ;;  %v626_v32 = vmul.f32 0.5, %v4307_v46  ;;  %v627_v52 = vmul.f32 0.5, %v4310_v44 }
 0x157   : > { %v2525_v53 = vpop.eup %2524  ;;  %1889 = vst [vmem:[%s3134_s17 + $0x6b8] sm:$0xff] %v1633_v38  ;;  %v1379_v45 = vmul.f32 0.5, %v1123_v47  ;;  %2546 = vtanh.f32 %v623_v5  ;;  %v628_v56 = vmul.f32 0.5, %v4315_v41  ;;  %v629_v28 = vmul.f32 0.5, %v4318_v6 }
 0x158   : > { %v2527_v25 = vpop.eup %2526  ;;  %v1634_v31 = vmul.f32 %v1378_v62, %v4211_v55  ;;  %v1124_v16 = vadd.f32 1.0, %v2525_v53  ;;  %2548 = vtanh.f32 %v624_v23  ;;  %v630_v30 = vmul.f32 0.5, %v4323_v10 }
 0x159   : > { %v1635_v2 = vmul.f32 %v1379_v45, %v4216_v9  ;;  %v1125_v21 = vadd.f32 1.0, %v2527_v25  ;;  %2550 = vtanh.f32 %v625_v40  ;;  %v631_v61 = vmul.f32 0.5, %v4329_v48 }
 0x15a   : > { %1890 = vst [vmem:[%s3134_s17 + $0x6c0] sm:$0xff] %v1634_v31  ;;  %v1380_v55 = vmul.f32 0.5, %v1124_v16  ;;  %2552 = vtanh.f32 %v626_v32  ;;  %v632_v7 = vmul.f32 0.5, %v4335_v17  ;;  %v633_v63 = vmul.f32 0.5, %v4338_v42 }
 0x15b   : > { %v2529_v37 = vpop.eup %2528  ;;  %1891 = vst [vmem:[%s3134_s17 + $0x6c8] sm:$0xff] %v1635_v2  ;;  %v1381_v9 = vmul.f32 0.5, %v1125_v21  ;;  %2554 = vtanh.f32 %v627_v52  ;;  %v634_v39 = vmul.f32 0.5, %v4343_v60  ;;  %v635_v12 = vmul.f32 0.5, %v4346_v1 }
 0x15c   : > { %v2531_v36 = vpop.eup %2530  ;;  %v1636_v50 = vmul.f32 %v1380_v55, %v4227_v58  ;;  %v1126_v26 = vadd.f32 1.0, %v2529_v37  ;;  %2556 = vtanh.f32 %v628_v56  ;;  %v636_v19 = vmul.f32 0.5, %v4351_v29 }
 0x15d   : > { %v2533_v54 = vpop.eup %2532  ;;  %v1637_v43 = vmul.f32 %v1381_v9, %v4232_v15  ;;  %v1127_v11 = vadd.f32 1.0, %v2531_v36  ;;  %2558 = vtanh.f32 %v629_v28  ;;  %v637_v5 = vmul.f32 0.5, %v4357_v51 }
 0x15e   : > { %v2535_v24 = vpop.eup %2534  ;;  %1892 = vst [vmem:[%s3134_s17 + $0x6d0] sm:$0xff] %v1636_v50  ;;  %v1382_v22 = vmul.f32 0.5, %v1126_v26  ;;  %v1128_v49 = vadd.f32 1.0, %v2533_v54  ;;  %2560 = vtanh.f32 %v630_v30  ;;  %v638_v58 = vmul.f32 0.5, %v4363_v57  ;;  %v4392_v26 = vld [vmem:[%s2813_s30 + $0x7b8] sm:$0xff] }
 0x15f   : > { %v2537_v23 = vpop.eup %2536  ;;  %1893 = vst [vmem:[%s3134_s17 + $0x6d8] sm:$0xff] %v1637_v43  ;;  %v1383_v38 = vmul.f32 0.5, %v1127_v11  ;;  %v1129_v47 = vadd.f32 1.0, %v2535_v24  ;;  %2562 = vtanh.f32 %v631_v61  ;;  %v639_v40 = vmul.f32 0.5, %v4368_v35 }
 0x160   : > { %v2539_v15 = vpop.eup %2538  ;;  %v1638_v62 = vmul.f32 %v1382_v22, %v4243_v18  ;;  %v1384_v32 = vmul.f32 0.5, %v1128_v49  ;;  %v1130_v52 = vadd.f32 1.0, %v2537_v23  ;;  %2564 = vtanh.f32 %v632_v7 }
 0x161   : > { %v2541_v53 = vpop.eup %2540  ;;  %v1639_v45 = vmul.f32 %v1383_v38, %v4248_v14  ;;  %v1385_v56 = vmul.f32 0.5, %v1129_v47  ;;  %v1131_v28 = vadd.f32 1.0, %v2539_v15  ;;  %2566 = vtanh.f32 %v633_v63  ;;  %v4403_v47 = vld [vmem:[%s2813_s30 + $0x7c0] sm:$0xff] }
 0x162   : > { %v2543_v25 = vpop.eup %2542  ;;  %1894 = vst [vmem:[%s3134_s17 + $0x6e0] sm:$0xff] %v1638_v62  ;;  %v1640_v31 = vmul.f32 %v1384_v32, %v4253_v13  ;;  %v1386_v16 = vmul.f32 0.5, %v1130_v52  ;;  %v1132_v30 = vadd.f32 1.0, %v2541_v53  ;;  %2568 = vtanh.f32 %v634_v39  ;;  %v4387_v39 = vld [vmem:[%s2813_s30 + $0x7b0] sm:$0xff]  ;;  %v4408_v32 = vld [vmem:[%s2813_s30 + $0x7c8] sm:$0xff] }
 0x163   : > { %v2545_v18 = vpop.eup %2544  ;;  %1895 = vst [vmem:[%s3134_s17 + $0x6e8] sm:$0xff] %v1639_v45  ;;  %v1641_v2 = vmul.f32 %v1385_v56, %v4259_v8  ;;  %v1387_v21 = vmul.f32 0.5, %v1131_v28  ;;  %v1133_v61 = vadd.f32 1.0, %v2543_v25  ;;  %2570 = vtanh.f32 %v635_v12 }
 0x164   : > { %v2547_v14 = vpop.eup %2546  ;;  %1896 = vst [vmem:[%s3134_s17 + $0x6f0] sm:$0xff] %v1640_v31  ;;  %v1642_v55 = vmul.f32 %v1386_v16, %v4265_v33  ;;  %v1388_v7 = vmul.f32 0.5, %v1132_v30  ;;  %v1134_v13 = vadd.f32 1.0, %v2545_v18  ;;  %2572 = vtanh.f32 %v636_v19 }
 0x165   : > { %v2549_v63 = vpop.eup %2548  ;;  %1897 = vst [vmem:[%s3134_s17 + $0x6f8] sm:$0xff] %v1641_v2  ;;  %v1643_v37 = vmul.f32 %v1387_v21, %v4271_v4  ;;  %v1389_v9 = vmul.f32 0.5, %v1133_v61  ;;  %v1135_v8 = vadd.f32 1.0, %v2547_v14  ;;  %2574 = vtanh.f32 %v637_v5  ;;  %v4419_v21 = vld [vmem:[%s2813_s30 + $0x7d0] sm:$0xff] }
 0x166   : > { %v2551_v12 = vpop.eup %2550  ;;  %1898 = vst [vmem:[%s3134_s17 + $0x700] sm:$0xff] %v1642_v55  ;;  %v1644_v36 = vmul.f32 %v1388_v7, %v4277_v34  ;;  %v1390_v33 = vmul.f32 0.5, %v1134_v13  ;;  %v1136_v50 = vadd.f32 1.0, %v2549_v63  ;;  %2576 = vtanh.f32 %v638_v58  ;;  %v4424_v7 = vld [vmem:[%s2813_s30 + $0x7d8] sm:$0xff] }
 0x167   : > { %v2553_v19 = vpop.eup %2552  ;;  %1899 = vst [vmem:[%s3134_s17 + $0x708] sm:$0xff] %v1643_v37  ;;  %v1645_v4 = vmul.f32 %v1389_v9, %v4280_v20  ;;  %v1391_v54 = vmul.f32 0.5, %v1135_v8  ;;  %v1137_v43 = vadd.f32 1.0, %v2551_v12  ;;  %2578 = vtanh.f32 %v639_v40 }
 0x168   : > { %v2555_v11 = vpop.eup %2554  ;;  %1900 = vst [vmem:[%s3134_s17 + $0x710] sm:$0xff] %v1644_v36  ;;  %v1646_v5 = vmul.f32 %v1390_v33, %v4286_v0  ;;  %v1392_v34 = vmul.f32 0.5, %v1136_v50  ;;  %v1138_v24 = vadd.f32 1.0, %v2553_v19  ;;  %v640_v22 = vmul.f32 0.5, %v4387_v39 }
 0x169   : > { %v2557_v49 = vpop.eup %2556  ;;  %1901 = vst [vmem:[%s3134_s17 + $0x718] sm:$0xff] %v1645_v4  ;;  %v1647_v58 = vmul.f32 %v1391_v54, %v4289_v59  ;;  %v1393_v20 = vmul.f32 0.5, %v1137_v43  ;;  %v1139_v23 = vadd.f32 1.0, %v2555_v11  ;;  %v641_v38 = vmul.f32 0.5, %v4392_v26  ;;  %v4435_v54 = vld [vmem:[%s2813_s30 + $0x7e0] sm:$0xff] }
 0x16a   : > { %v2559_v40 = vpop.eup %2558  ;;  %1902 = vst [vmem:[%s3134_s17 + $0x720] sm:$0xff] %v1646_v5  ;;  %v1648_v0 = vmul.f32 %v1392_v34, %v4295_v27  ;;  %v1394_v15 = vmul.f32 0.5, %v1138_v24  ;;  %v1140_v62 = vadd.f32 1.0, %v2557_v49  ;;  %2580 = vtanh.f32 %v640_v22  ;;  %v4440_v34 = vld [vmem:[%s2813_s30 + $0x7e8] sm:$0xff] }
 0x16b   : > { %v2561_v52 = vpop.eup %2560  ;;  %1903 = vst [vmem:[%s3134_s17 + $0x728] sm:$0xff] %v1647_v58  ;;  %v1649_v59 = vmul.f32 %v1393_v20, %v4301_v3  ;;  %v1395_v53 = vmul.f32 0.5, %v1139_v23  ;;  %v1141_v45 = vadd.f32 1.0, %v2559_v40  ;;  %2582 = vtanh.f32 %v641_v38  ;;  %v4445_v58 = vld [vmem:[%s2813_s30 + $0x7f0] sm:$0xff] }
 0x16c   : > { %v2563_v56 = vpop.eup %2562  ;;  %1904 = vst [vmem:[%s3134_s17 + $0x730] sm:$0xff] %v1648_v0  ;;  %v1650_v28 = vmul.f32 %v1394_v15, %v4307_v46  ;;  %v1396_v27 = vmul.f32 0.5, %v1140_v62  ;;  %v1142_v25 = vadd.f32 1.0, %v2561_v52  ;;  %v642_v31 = vmul.f32 0.5, %v4403_v47  ;;  %v4451_v0 = vld [vmem:[%s2813_s30 + $0x7f8] sm:$0xff] }
 0x16d   : > { %v2565_v16 = vpop.eup %2564  ;;  %1905 = vst [vmem:[%s3134_s17 + $0x738] sm:$0xff] %v1649_v59  ;;  %v1651_v30 = vmul.f32 %v1395_v53, %v4310_v44  ;;  %v1397_v3 = vmul.f32 0.5, %v1141_v45  ;;  %v1143_v18 = vadd.f32 1.0, %v2563_v56  ;;  %v643_v2 = vmul.f32 0.5, %v4408_v32 }
 0x16e   : > { %v2567_v61 = vpop.eup %2566  ;;  %1906 = vst [vmem:[%s3134_s17 + $0x740] sm:$0xff] %v1650_v28  ;;  %v1652_v46 = vmul.f32 %v1396_v27, %v4315_v41  ;;  %v1398_v14 = vmul.f32 0.5, %v1142_v25  ;;  %v1144_v55 = vadd.f32 1.0, %v2565_v16  ;;  %2584 = vtanh.f32 %v642_v31 }
 0x16f   : > { %v2569_v13 = vpop.eup %2568  ;;  %1907 = vst [vmem:[%s3134_s17 + $0x748] sm:$0xff] %v1651_v30  ;;  %v1653_v44 = vmul.f32 %v1397_v3, %v4318_v6  ;;  %v1399_v63 = vmul.f32 0.5, %v1143_v18  ;;  %v1145_v37 = vadd.f32 1.0, %v2567_v61  ;;  %2586 = vtanh.f32 %v643_v2 }
 0x170   : > { %v2571_v9 = vpop.eup %2570  ;;  %1908 = vst [vmem:[%s3134_s17 + $0x750] sm:$0xff] %v1652_v46  ;;  %v1654_v8 = vmul.f32 %v1398_v14, %v4323_v10  ;;  %v1400_v41 = vmul.f32 0.5, %v1144_v55  ;;  %v1146_v12 = vadd.f32 1.0, %v2569_v13  ;;  %v644_v36 = vmul.f32 0.5, %v4419_v21 }
 0x171   : > { %v2573_v33 = vpop.eup %2572  ;;  %1909 = vst [vmem:[%s3134_s17 + $0x758] sm:$0xff] %v1653_v44  ;;  %v1655_v50 = vmul.f32 %v1399_v63, %v4329_v48  ;;  %v1401_v6 = vmul.f32 0.5, %v1145_v37  ;;  %v1147_v19 = vadd.f32 1.0, %v2571_v9  ;;  %v645_v4 = vmul.f32 0.5, %v4424_v7 }
 0x172   : > { %v2575_v43 = vpop.eup %2574  ;;  %1910 = vst [vmem:[%s3134_s17 + $0x760] sm:$0xff] %v1654_v8  ;;  %v1656_v10 = vmul.f32 %v1400_v41, %v4335_v17  ;;  %v1402_v11 = vmul.f32 0.5, %v1146_v12  ;;  %v1148_v5 = vadd.f32 1.0, %v2573_v33  ;;  %2588 = vtanh.f32 %v644_v36 }
 0x173   : > { %v2577_v48 = vpop.eup %2576  ;;  %1911 = vst [vmem:[%s3134_s17 + $0x768] sm:$0xff] %v1655_v50  ;;  %v1657_v24 = vmul.f32 %v1401_v6, %v4338_v42  ;;  %v1403_v22 = vmul.f32 0.5, %v1147_v19  ;;  %v1149_v49 = vadd.f32 1.0, %v2575_v43  ;;  %2590 = vtanh.f32 %v645_v4 }
 0x174   : > { %v2579_v20 = vpop.eup %2578  ;;  %1912 = vst [vmem:[%s3134_s17 + $0x770] sm:$0xff] %v1656_v10  ;;  %v1658_v17 = vmul.f32 %v1402_v11, %v4343_v60  ;;  %v1404_v23 = vmul.f32 0.5, %v1148_v5  ;;  %v1150_v38 = vadd.f32 1.0, %v2577_v48  ;;  %v646_v40 = vmul.f32 0.5, %v4435_v54 }
 0x175   : > { %1913 = vst [vmem:[%s3134_s17 + $0x778] sm:$0xff] %v1657_v24  ;;  %v1659_v42 = vmul.f32 %v1403_v22, %v4346_v1  ;;  %v1405_v15 = vmul.f32 0.5, %v1149_v49  ;;  %v1151_v62 = vadd.f32 1.0, %v2579_v20  ;;  %v647_v52 = vmul.f32 0.5, %v4440_v34 }
 0x176   : > { %1914 = vst [vmem:[%s3134_s17 + $0x780] sm:$0xff] %v1658_v17  ;;  %v1660_v59 = vmul.f32 %v1404_v23, %v4351_v29  ;;  %v1406_v60 = vmul.f32 0.5, %v1150_v38  ;;  %2592 = vtanh.f32 %v646_v40  ;;  %v648_v53 = vmul.f32 0.5, %v4445_v58 }
 0x177   : > { %v2581_v45 = vpop.eup %2580  ;;  %1915 = vst [vmem:[%s3134_s17 + $0x788] sm:$0xff] %v1659_v42  ;;  %v1661_v56 = vmul.f32 %v1405_v15, %v4357_v51  ;;  %v1407_v1 = vmul.f32 0.5, %v1151_v62  ;;  %2594 = vtanh.f32 %v647_v52  ;;  %v649_v28 = vmul.f32 0.5, %v4451_v0 }
 0x178   : > { %v2583_v27 = vpop.eup %2582  ;;  %1916 = vst [vmem:[%s3134_s17 + $0x790] sm:$0xff] %v1660_v59  ;;  %v1662_v25 = vmul.f32 %v1406_v60, %v4363_v57  ;;  %v1152_v31 = vadd.f32 1.0, %v2581_v45  ;;  %2596 = vtanh.f32 %v648_v53 }
 0x179   : > { %1917 = vst [vmem:[%s3134_s17 + $0x798] sm:$0xff] %v1661_v56  ;;  %v1663_v29 = vmul.f32 %v1407_v1, %v4368_v35  ;;  %v1153_v16 = vadd.f32 1.0, %v2583_v27  ;;  %2598 = vtanh.f32 %v649_v28 }
 0x17a   : > { %1918 = vst [vmem:[%s3134_s17 + $0x7a0] sm:$0xff] %v1662_v25  ;;  %v1408_v51 = vmul.f32 0.5, %v1152_v31 }
 0x17b   : > { %v2585_v30 = vpop.eup %2584  ;;  %1919 = vst [vmem:[%s3134_s17 + $0x7a8] sm:$0xff] %v1663_v29  ;;  %v1409_v3 = vmul.f32 0.5, %v1153_v16 }
 0x17c   : > { %v2587_v18 = vpop.eup %2586  ;;  %v1664_v2 = vmul.f32 %v1408_v51, %v4387_v39  ;;  %v1154_v61 = vadd.f32 1.0, %v2585_v30 }
 0x17d   : > { %v1665_v57 = vmul.f32 %v1409_v3, %v4392_v26  ;;  %v1155_v46 = vadd.f32 1.0, %v2587_v18 }
 0x17e   : > { %1920 = vst [vmem:[%s3134_s17 + $0x7b0] sm:$0xff] %v1664_v2  ;;  %v1410_v14 = vmul.f32 0.5, %v1154_v61 }
 0x17f   : > { %v2589_v35 = vpop.eup %2588  ;;  %1921 = vst [vmem:[%s3134_s17 + $0x7b8] sm:$0xff] %v1665_v57  ;;  %v1411_v55 = vmul.f32 0.5, %v1155_v46 }
 0x180   : > { %v2591_v13 = vpop.eup %2590  ;;  %v1666_v44 = vmul.f32 %v1410_v14, %v4403_v47  ;;  %v1156_v63 = vadd.f32 1.0, %v2589_v35 }
 0x181   : > { %v1667_v37 = vmul.f32 %v1411_v55, %v4408_v32  ;;  %v1157_v9 = vadd.f32 1.0, %v2591_v13 }
 0x182   : > { %1922 = vst [vmem:[%s3134_s17 + $0x7c0] sm:$0xff] %v1666_v44  ;;  %v1412_v39 = vmul.f32 0.5, %v1156_v63 }
 0x183   : > { %v2593_v8 = vpop.eup %2592  ;;  %1923 = vst [vmem:[%s3134_s17 + $0x7c8] sm:$0xff] %v1667_v37  ;;  %v1413_v26 = vmul.f32 0.5, %v1157_v9 }
 0x184   : > { %v2595_v41 = vpop.eup %2594  ;;  %v1668_v12 = vmul.f32 %v1412_v39, %v4419_v21  ;;  %v1158_v36 = vadd.f32 1.0, %v2593_v8 }
 0x185   : > { %v2597_v33 = vpop.eup %2596  ;;  %v1669_v47 = vmul.f32 %v1413_v26, %v4424_v7  ;;  %v1159_v50 = vadd.f32 1.0, %v2595_v41 }
 0x186   : > { %v2599_v6 = vpop.eup %2598  ;;  %1924 = vst [vmem:[%s3134_s17 + $0x7d0] sm:$0xff] %v1668_v12  ;;  %v1414_v32 = vmul.f32 0.5, %v1158_v36  ;;  %v1160_v19 = vadd.f32 1.0, %v2597_v33 }
 0x187   : > { %1925 = vst [vmem:[%s3134_s17 + $0x7d8] sm:$0xff] %v1669_v47  ;;  %v1415_v4 = vmul.f32 0.5, %v1159_v50  ;;  %v1161_v43 = vadd.f32 1.0, %v2599_v6 }
 0x188   : > { %v1670_v21 = vmul.f32 %v1414_v32, %v4435_v54  ;;  %v1416_v10 = vmul.f32 0.5, %v1160_v19 }
 0x189   : > { %v1671_v7 = vmul.f32 %v1415_v4, %v4440_v34  ;;  %v1417_v11 = vmul.f32 0.5, %v1161_v43 }
 0x18a   : > { %1926 = vst [vmem:[%s3134_s17 + $0x7e0] sm:$0xff] %v1670_v21  ;;  %v1672_v5 = vmul.f32 %v1416_v10, %v4445_v58 }
 0x18b   : > { %1927 = vst [vmem:[%s3134_s17 + $0x7e8] sm:$0xff] %v1671_v7  ;;  %v1673_v54 = vmul.f32 %v1417_v11, %v4451_v0 }
 0x18c   : > { %1928 = vst [vmem:[%s3134_s17 + $0x7f0] sm:$0xff] %v1672_v5 }
 0x18d   : > { %1929 = vst [vmem:[%s3134_s17 + $0x7f8] sm:$0xff] %v1673_v54 }
 0x18e   : > { %2641 = shalt.err (!%p2638_p10)
}
 0x18f   : > { %s2642_s13 = scalar_lea.hbm %s4489_s2, 32768  ;;  %s2646_s20 = scalar_lea.hbm %s4539_s1, 65536 }
 0x190   : > { %p2643_p0 = scmp.ne.s32.totalorder %s4489_s2, %s2642_s13  ;;  %p2647_p1 = scmp.lt.s32.totalorder %s4489_s2, %s4539_s1 }
 0x191   : > { %p2648_p3 = scmp.lt.s32.totalorder %s2646_s20, %s2642_s13 }
 0x192   : > { %p2644_p2 = pnand %p2643_p0, %p4662_p12 }
 0x193   : > { %p2649_p6 = por %p2648_p3, %p2647_p1 }
 0x194   : > { %p2645_p9 = pneg %p2644_p2 }
 0x196   : > { %p2650_p11 = pnand %p2649_p6, %p2645_p9 }
 0x198   : > { %2653 = shalt.err (!%p2650_p11)
}
 0x199   : > { %s2698_s24 = smov 1024   ;;  %s2699_s26 = smov 64  }
 0x19a   : > { %2040 = dma.vmem_to_hbm [thread:$0]  (%p4662_p12), %s4491_s27, 32768, %s4489_s2, %s1931_s10, %s2698_s24, %s2698_s24, %s2699_s26  }
 0x19b PF: > { %s1960_s30 = sand.u32 1, %s2680_s6   ;;  %p4663_p13 = scmp.ne.s32.totalorder %s4575_s19, 0 }
 0x19c   : > { %p4664_p4 = scmp.ge.s32.totalorder %s2692_s9, 2  ;;  %s1961_s17 = scalar_lea.sflag [#allocation4], %s1960_s30 }
 0x19e   : > { %p2047_p5 = pnand %p4664_p4, %p4663_p13 }
 0x1a0   : > { %p2048_p7 = pneg %p2047_p5 }
 0x1a2   : > { %2675 = dma.done.wait (%p2048_p7), %s1961_s17, 32768  }
 0x1a3   : > { %2677 = vsyncadd (%p2048_p7), %s1961_s17, 4294934528  ;;  %p14_p8 = scmp.ge.s32.totalorder %s2735_s12, 4   ;;  %s4665_s6 = smov %s2684_s7 }
 0x1a4   : > { %s4666_s7 = smov %s2688_s8  ;;  %s4667_s8 = smov %s2747_s15 }
 0x1a5   : > { %s4668_s9 = smov %s2735_s12  ;;  %16 = sbr.rel (!%p14_p8) target bundleno = 5 (0x5), region = 69 }
 0x1aa   :  { %1966 = vsyncpa [#allocation3], 1 }
 0x1ab   :  { %1968 = vsyncpa [#allocation3 + $0x1], 1 }
 0x1ac   :  { %1969 = vsyncpa [#allocation4], 1 }
 0x1ad   :  { %1971 = vsyncpa [#allocation4 + $0x1], 1 }

</bundles_post_ra>
